<compile_context>
chip_gen: v7x
topology: tpu7x:2x2x1
jax: 0.10.0
libtpu: 0.0.40
codegen_flags: <defaults>
</compile_context>

<pallas_src>
import numpy as np
import jax
import jax.numpy as jnp
from jax.experimental import pallas as pl
from jax.experimental.pallas import tpu as pltpu

SUBLANES = 8  # pad batch to a full sublane group


# ------------------------------ Fused kernel ----------------------------------

def make_fused_kernel(num_layers, seq, bp):
    """Fused wavefront [LSTM x num_layers] -> ReLU -> Linear -> Softmax."""

    def kernel(*refs):
        # refs = x2,
        #        wih0, whh0, b0,                      (layer 0)
        #        (wstack_l, b_l) for l = 1..L-1,      (stacked [Wih;Whh])
        #        wfc_pad, bfc_pad,
        #        out,
        #        h_hist (VMEM scratch, last-layer hidden history)
        x_ref = refs[0]
        idx = 1
        wih0_ref, whh0_ref, b0_ref = refs[idx], refs[idx + 1], refs[idx + 2]
        idx += 3
        upper_refs = []
        for _ in range(1, num_layers):
            upper_refs.append((refs[idx], refs[idx + 1]))
            idx += 2
        wfc_ref, bfc_ref = refs[idx], refs[idx + 1]
        out_ref = refs[idx + 2]
        h_hist = refs[idx + 3]                     # VMEM scratch (S*Bp, H)

        H = h_hist.shape[1]
        G = 4 * H

        # Lane mask for the g-gate block [2H, 3H): tanh there, sigmoid elsewhere.
        # (Hoisted: constants computed once, outside the unrolled loop.)
        lane = jax.lax.broadcasted_iota(jnp.int32, (bp, G), 1)
        g_mask = jnp.logical_and(lane >= 2 * H, lane < 3 * H)
        gate_scale = jnp.where(g_mask, 1.0, 0.5).astype(jnp.float32)

        # Hoisted layer-0 input projection for ALL timesteps: one big MXU
        # matmul, off the serial critical path.
        xproj0 = jnp.dot(x_ref[...], wih0_ref[...],
                         preferred_element_type=jnp.float32) + b0_ref[...]
        whh0 = whh0_ref[...]
        upper_w = [(w_ref[...], b_ref[...]) for (w_ref, b_ref) in upper_refs]

        def lstm_cell(gates, c):
            # Single transcendental pass: tanh on the g block, sigmoid
            # (= 0.5*tanh(x/2)+0.5) elsewhere, via one full-vreg tanh.
            y = jnp.tanh(gates * gate_scale)
            act = jnp.where(g_mask, y, 0.5 * y + 0.5)
            i_g = act[:, 0 * H:1 * H]
            f_g = act[:, 1 * H:2 * H]
            g_g = act[:, 2 * H:3 * H]
            o_g = act[:, 3 * H:4 * H]
            c_new = f_g * c + i_g * g_g
            h_new = o_g * jnp.tanh(c_new)
            return h_new, c_new

        zeros = jnp.zeros((bp, H), jnp.float32)
        h_state = [zeros] * num_layers   # h_{l, t-1}
        c_state = [zeros] * num_layers   # c_{l, t-1}
        h_out = [None] * num_layers      # most recent layer-l output (prev macro step)

        # Wavefront macro loop: at macro step m, layer l runs timestep t = m - l.
        # All active layer-steps within one macro step are mutually independent,
        # so their MXU matmuls overlap.
        for m in range(seq + num_layers - 1):
            new_out = [None] * num_layers
            for l in range(num_layers):
                t = m - l
                if not (0 <= t < seq):
                    continue
                if l == 0:
                    gates = xproj0[t * bp:(t + 1) * bp, :] + jnp.dot(
                        h_state[0], whh0, preferred_element_type=jnp.float32)
                else:
                    w_l, b_l = upper_w[l - 1]
                    # Fold input + recurrent projections into one matmul.
                    inp = jnp.concatenate([h_out[l - 1], h_state[l]], axis=1)
                    gates = jnp.dot(inp, w_l,
                                    preferred_element_type=jnp.float32) + b_l
                h_new, c_new = lstm_cell(gates, c_state[l])
                h_state[l] = h_new
                c_state[l] = c_new
                new_out[l] = h_new
                if l == num_layers - 1:
                    # Sublane-aligned static-slice store into the VMEM history.
                    h_hist[pl.ds(t * bp, bp), :] = h_new
            for l in range(num_layers):
                if new_out[l] is not None:
                    h_out[l] = new_out[l]

        # Fused head: ReLU -> Linear (lane-dense, padded to 128) -> Softmax.
        hr = jnp.maximum(h_hist[...], 0.0)
        logits = jnp.dot(hr, wfc_ref[...],
                         preferred_element_type=jnp.float32) + bfc_ref[...]
        mx = jnp.max(logits, axis=-1, keepdims=True)
        e = jnp.exp(logits - mx)
        s = jnp.sum(e, axis=-1, keepdims=True)
        out_ref[...] = e * pl.reciprocal(s, approx=False)

    return kernel


# ------------------------------ Model wrapper ----------------------------------

def lstm_igt_forward(x, lstm_params, wfc_t, bfc):
    """x: (S, B, Din); lstm_params: [(wih_t, whh_t, b), ...]; wfc_t: (H, O)."""
    S, B, Din = x.shape
    H = lstm_params[0][1].shape[0]
    O = wfc_t.shape[1]
    Bp = ((B + SUBLANES - 1) // SUBLANES) * SUBLANES   # pad batch -> sublane mult
    OP = max(128, ((O + 127) // 128) * 128)            # lane-dense output width

    # Pad batch and pack (S, Bp, D) -> (S*Bp, D): sublane-dense kernel tiles,
    # sublane-group-aligned per-step slices. Padded rows are discarded at the end.
    x_p = jnp.zeros((S, Bp, Din), jnp.float32).at[:, :B, :].set(x)
    x2 = x_p.reshape(S * Bp, Din)

    # Layer 0: separate Wih/Whh (Wih projection is hoisted).
    # Layers >= 1: pre-stack [Wih; Whh] so the kernel does one matmul per step.
    flat_w = [lstm_params[0][0], lstm_params[0][1], lstm_params[0][2]]
    for (wih_t, whh_t, b) in lstm_params[1:]:
        flat_w += [jnp.concatenate([wih_t, whh_t], axis=0), b]

    # Lane-dense head: zero-pad weight columns, -1e9 bias in pad lanes so the
    # softmax contribution of pad lanes is ~0.
    wfc_pad = jnp.zeros((H, OP), jnp.float32).at[:, :O].set(wfc_t)
    bfc_pad = jnp.full((1, OP), -1e9, jnp.float32).at[:, :O].set(bfc)

    args = [x2] + flat_w + [wfc_pad, bfc_pad]
    vmem_spec = pl.BlockSpec(memory_space=pltpu.MemorySpace.VMEM)

    out2 = pl.pallas_call(
        make_fused_kernel(len(lstm_params), S, Bp),
        out_shape=jax.ShapeDtypeStruct((S * Bp, OP), jnp.float32),
        in_specs=[vmem_spec] * len(args),
        out_specs=vmem_spec,
        scratch_shapes=[pltpu.VMEM((S * Bp, H), jnp.float32)],
    )(*args)

    return out2.reshape(S, Bp, OP)[:, :B, :O]


# ----------------------------- Pure-JAX reference -------------------------------

def lstm_igt_reference(x, lstm_params, wfc_t, bfc):
    hp = jax.lax.Precision.HIGHEST
    out = x
    for (wih_t, whh_t, b) in lstm_params:
        H = whh_t.shape[0]
        B = x.shape[1]

        def step(carry, xt, wih_t=wih_t, whh_t=whh_t, b=b, H=H):
            h, c = carry
            gates = (jnp.dot(xt, wih_t, precision=hp)
                     + jnp.dot(h, whh_t, precision=hp) + b[0])
            i = jax.nn.sigmoid(gates[:, 0 * H:1 * H])
            f = jax.nn.sigmoid(gates[:, 1 * H:2 * H])
            g = jnp.tanh(gates[:, 2 * H:3 * H])
            o = jax.nn.sigmoid(gates[:, 3 * H:4 * H])
            c = f * c + i * g
            h = o * jnp.tanh(c)
            return (h, c), h

        init = (jnp.zeros((B, H), jnp.float32), jnp.zeros((B, H), jnp.float32))
        _, hs = jax.lax.scan(step, init, out)
        out = hs
    out = jnp.maximum(out, 0.0)
    logits = jnp.dot(out, wfc_t, precision=hp) + bfc[0]
    return jax.nn.softmax(logits, axis=-1)


# ------------------------------------ Main ---------------------------------------

if __name__ == "__main__":
    # IGT choices are one-hot over 4 decks -> in_dim = out_dim = 4
    SEQ, BATCH = 8, 2
    IN_DIM, HIDDEN, OUT_DIM, LAYERS = 4, 32, 4, 2

    key = jax.random.PRNGKey(0)
    k_x, key = jax.random.split(key)
    x = jax.random.uniform(k_x, (SEQ, BATCH, IN_DIM), jnp.float32)

    # PyTorch nn.LSTM default init: U(-k, k), k = 1/sqrt(hidden)
    k_init = 1.0 / np.sqrt(HIDDEN)
    lstm_params = []
    d_in = IN_DIM
    for _ in range(LAYERS):
        k1, k2, k3, k4, key = jax.random.split(key, 5)
        # stored pre-transposed: x @ wih_t, h @ whh_t  (gate order i,f,g,o)
        wih_t = jax.random.uniform(k1, (d_in, 4 * HIDDEN), jnp.float32,
                                   -k_init, k_init)
        whh_t = jax.random.uniform(k2, (HIDDEN, 4 * HIDDEN), jnp.float32,
                                   -k_init, k_init)
        b_ih = jax.random.uniform(k3, (4 * HIDDEN,), jnp.float32, -k_init, k_init)
        b_hh = jax.random.uniform(k4, (4 * HIDDEN,), jnp.float32, -k_init, k_init)
        b = (b_ih + b_hh).reshape(1, 4 * HIDDEN)
        lstm_params.append((wih_t, whh_t, b))
        d_in = HIDDEN

    k5, k6, key = jax.random.split(key, 3)
    k_fc = 1.0 / np.sqrt(HIDDEN)
    wfc_t = jax.random.uniform(k5, (HIDDEN, OUT_DIM), jnp.float32, -k_fc, k_fc)
    bfc = jax.random.uniform(k6, (1, OUT_DIM), jnp.float32, -k_fc, k_fc)

    fwd = jax.jit(lstm_igt_forward)
    out = fwd(x, lstm_params, wfc_t, bfc)
    out = jax.block_until_ready(out)

    ref = lstm_igt_reference(x, lstm_params, wfc_t, bfc)
    ref = jax.block_until_ready(ref)

    assert out.shape == (SEQ, BATCH, OUT_DIM), out.shape
    np.testing.assert_allclose(np.asarray(out), np.asarray(ref),
                               rtol=1e-4, atol=1e-4)
    # rows sum to 1 (softmax sanity)
    np.testing.assert_allclose(np.asarray(out).sum(-1), 1.0, atol=1e-5)

    print("KERNEL_OK")
</pallas_src>

<mosaic_0001>
module attributes {stable_mosaic.version = 11 : i64} {
  func.func @kernel(%arg0: memref<64x4xf32, #tpu.memory_space<vmem>>, %arg1: memref<4x128xf32, #tpu.memory_space<vmem>>, %arg2: memref<32x128xf32, #tpu.memory_space<vmem>>, %arg3: memref<1x128xf32, #tpu.memory_space<vmem>>, %arg4: memref<64x128xf32, #tpu.memory_space<vmem>>, %arg5: memref<1x128xf32, #tpu.memory_space<vmem>>, %arg6: memref<32x128xf32, #tpu.memory_space<vmem>>, %arg7: memref<1x128xf32, #tpu.memory_space<vmem>>, %arg8: memref<64x128xf32, #tpu.memory_space<vmem>>, %arg9: memref<64x32xf32, #tpu.memory_space<vmem>>) attributes {dimension_semantics = [], scalar_prefetch = 0 : i64, scratch_operands = 1 : i64, tpu.core_type = #tpu.core_type<tc>} {
    %0 = tpu.iota {dimensions = array<i32: 1>} : vector<8x128xi32>
    %c64_i32 = arith.constant 64 : i32
    %1 = vector.broadcast %c64_i32 : i32 to vector<8x128xi32>
    %2 = arith.cmpi sge, %0, %1 : vector<8x128xi32>
    %c96_i32 = arith.constant 96 : i32
    %3 = vector.broadcast %c96_i32 : i32 to vector<8x128xi32>
    %4 = arith.cmpi slt, %0, %3 : vector<8x128xi32>
    %5 = arith.andi %2, %4 : vector<8x128xi1>
    %cst = arith.constant 1.000000e+00 : f32
    %cst_0 = arith.constant 5.000000e-01 : f32
    %6 = vector.broadcast %cst : f32 to vector<8x128xf32>
    %7 = vector.broadcast %cst_0 : f32 to vector<8x128xf32>
    %8 = arith.select %5, %6, %7 : vector<8x128xi1>, vector<8x128xf32>
    %c0 = arith.constant 0 : index
    %c0_1 = arith.constant 0 : index
    %9 = vector.load %arg0[%c0, %c0_1] : memref<64x4xf32, #tpu.memory_space<vmem>>, vector<64x4xf32>
    %c0_2 = arith.constant 0 : index
    %c0_3 = arith.constant 0 : index
    %10 = vector.load %arg1[%c0_2, %c0_3] : memref<4x128xf32, #tpu.memory_space<vmem>>, vector<4x128xf32>
    %cst_4 = arith.constant dense<0.000000e+00> : vector<64x128xf32>
    %11 = tpu.matmul %9, %10, %cst_4 {dimension_numbers = #tpu.dot_dimension_numbers<[1], [0], [0], [1], [0, 0, 1, 1], [], []>} : vector<64x4xf32>, vector<4x128xf32>, vector<64x128xf32> -> vector<64x128xf32>
    %c0_5 = arith.constant 0 : index
    %c0_6 = arith.constant 0 : index
    %12 = vector.load %arg3[%c0_5, %c0_6] : memref<1x128xf32, #tpu.memory_space<vmem>>, vector<1x128xf32>
    %13 = vector.broadcast %12 : vector<1x128xf32> to vector<64x128xf32>
    %14 = arith.addf %11, %13 : vector<64x128xf32>
    %c0_7 = arith.constant 0 : index
    %c0_8 = arith.constant 0 : index
    %15 = vector.load %arg2[%c0_7, %c0_8] : memref<32x128xf32, #tpu.memory_space<vmem>>, vector<32x128xf32>
    %c0_9 = arith.constant 0 : index
    %c0_10 = arith.constant 0 : index
    %16 = vector.load %arg4[%c0_9, %c0_10] : memref<64x128xf32, #tpu.memory_space<vmem>>, vector<64x128xf32>
    %c0_11 = arith.constant 0 : index
    %c0_12 = arith.constant 0 : index
    %17 = vector.load %arg5[%c0_11, %c0_12] : memref<1x128xf32, #tpu.memory_space<vmem>>, vector<1x128xf32>
    %cst_13 = arith.constant 0.000000e+00 : f32
    %18 = vector.broadcast %cst_13 : f32 to vector<8x32xf32>
    %19 = vector.extract_strided_slice %14 {offsets = [0, 0], sizes = [8, 128], strides = [1, 1]} : vector<64x128xf32> to vector<8x128xf32>
    %cst_14 = arith.constant dense<0.000000e+00> : vector<8x128xf32>
    %20 = tpu.matmul %18, %15, %cst_14 {dimension_numbers = #tpu.dot_dimension_numbers<[1], [0], [0], [1], [0, 0, 1, 1], [], []>} : vector<8x32xf32>, vector<32x128xf32>, vector<8x128xf32> -> vector<8x128xf32>
    %21 = arith.addf %19, %20 : vector<8x128xf32>
    %22 = arith.mulf %21, %8 : vector<8x128xf32>
    %23 = math.tanh %22 : vector<8x128xf32>
    %cst_15 = arith.constant 5.000000e-01 : f32
    %24 = vector.broadcast %cst_15 : f32 to vector<8x128xf32>
    %25 = arith.mulf %24, %23 : vector<8x128xf32>
    %cst_16 = arith.constant 5.000000e-01 : f32
    %26 = vector.broadcast %cst_16 : f32 to vector<8x128xf32>
    %27 = arith.addf %25, %26 : vector<8x128xf32>
    %28 = arith.select %5, %23, %27 : vector<8x128xi1>, vector<8x128xf32>
    %29 = vector.extract_strided_slice %28 {offsets = [0, 0], sizes = [8, 32], strides = [1, 1]} : vector<8x128xf32> to vector<8x32xf32>
    %30 = vector.extract_strided_slice %28 {offsets = [0, 32], sizes = [8, 32], strides = [1, 1]} : vector<8x128xf32> to vector<8x32xf32>
    %31 = vector.extract_strided_slice %28 {offsets = [0, 64], sizes = [8, 32], strides = [1, 1]} : vector<8x128xf32> to vector<8x32xf32>
    %32 = vector.extract_strided_slice %28 {offsets = [0, 96], sizes = [8, 32], strides = [1, 1]} : vector<8x128xf32> to vector<8x32xf32>
    %33 = arith.mulf %30, %18 : vector<8x32xf32>
    %34 = arith.mulf %29, %31 : vector<8x32xf32>
    %35 = arith.addf %33, %34 : vector<8x32xf32>
    %36 = math.tanh %35 : vector<8x32xf32>
    %37 = arith.mulf %32, %36 : vector<8x32xf32>
    %38 = vector.extract_strided_slice %14 {offsets = [8, 0], sizes = [8, 128], strides = [1, 1]} : vector<64x128xf32> to vector<8x128xf32>
    %cst_17 = arith.constant dense<0.000000e+00> : vector<8x128xf32>
    %39 = tpu.matmul %37, %15, %cst_17 {dimension_numbers = #tpu.dot_dimension_numbers<[1], [0], [0], [1], [0, 0, 1, 1], [], []>} : vector<8x32xf32>, vector<32x128xf32>, vector<8x128xf32> -> vector<8x128xf32>
    %40 = arith.addf %38, %39 : vector<8x128xf32>
    %41 = arith.mulf %40, %8 : vector<8x128xf32>
    %42 = math.tanh %41 : vector<8x128xf32>
    %cst_18 = arith.constant 5.000000e-01 : f32
    %43 = vector.broadcast %cst_18 : f32 to vector<8x128xf32>
    %44 = arith.mulf %43, %42 : vector<8x128xf32>
    %cst_19 = arith.constant 5.000000e-01 : f32
    %45 = vector.broadcast %cst_19 : f32 to vector<8x128xf32>
    %46 = arith.addf %44, %45 : vector<8x128xf32>
    %47 = arith.select %5, %42, %46 : vector<8x128xi1>, vector<8x128xf32>
    %48 = vector.extract_strided_slice %47 {offsets = [0, 0], sizes = [8, 32], strides = [1, 1]} : vector<8x128xf32> to vector<8x32xf32>
    %49 = vector.extract_strided_slice %47 {offsets = [0, 32], sizes = [8, 32], strides = [1, 1]} : vector<8x128xf32> to vector<8x32xf32>
    %50 = vector.extract_strided_slice %47 {offsets = [0, 64], sizes = [8, 32], strides = [1, 1]} : vector<8x128xf32> to vector<8x32xf32>
    %51 = vector.extract_strided_slice %47 {offsets = [0, 96], sizes = [8, 32], strides = [1, 1]} : vector<8x128xf32> to vector<8x32xf32>
    %52 = arith.mulf %49, %35 : vector<8x32xf32>
    %53 = arith.mulf %48, %50 : vector<8x32xf32>
    %54 = arith.addf %52, %53 : vector<8x32xf32>
    %55 = math.tanh %54 : vector<8x32xf32>
    %56 = arith.mulf %51, %55 : vector<8x32xf32>
    %57 = tpu.concatenate %37, %18 in 1 : vector<8x32xf32>, vector<8x32xf32> -> vector<8x64xf32>
    %cst_20 = arith.constant dense<0.000000e+00> : vector<8x128xf32>
    %58 = tpu.matmul %57, %16, %cst_20 {dimension_numbers = #tpu.dot_dimension_numbers<[1], [0], [0], [1], [0, 0, 1, 1], [], []>} : vector<8x64xf32>, vector<64x128xf32>, vector<8x128xf32> -> vector<8x128xf32>
    %59 = vector.broadcast %17 : vector<1x128xf32> to vector<8x128xf32>
    %60 = arith.addf %58, %59 : vector<8x128xf32>
    %61 = arith.mulf %60, %8 : vector<8x128xf32>
    %62 = math.tanh %61 : vector<8x128xf32>
    %cst_21 = arith.constant 5.000000e-01 : f32
    %63 = vector.broadcast %cst_21 : f32 to vector<8x128xf32>
    %64 = arith.mulf %63, %62 : vector<8x128xf32>
    %cst_22 = arith.constant 5.000000e-01 : f32
    %65 = vector.broadcast %cst_22 : f32 to vector<8x128xf32>
    %66 = arith.addf %64, %65 : vector<8x128xf32>
    %67 = arith.select %5, %62, %66 : vector<8x128xi1>, vector<8x128xf32>
    %68 = vector.extract_strided_slice %67 {offsets = [0, 0], sizes = [8, 32], strides = [1, 1]} : vector<8x128xf32> to vector<8x32xf32>
    %69 = vector.extract_strided_slice %67 {offsets = [0, 32], sizes = [8, 32], strides = [1, 1]} : vector<8x128xf32> to vector<8x32xf32>
    %70 = vector.extract_strided_slice %67 {offsets = [0, 64], sizes = [8, 32], strides = [1, 1]} : vector<8x128xf32> to vector<8x32xf32>
    %71 = vector.extract_strided_slice %67 {offsets = [0, 96], sizes = [8, 32], strides = [1, 1]} : vector<8x128xf32> to vector<8x32xf32>
    %72 = arith.mulf %69, %18 : vector<8x32xf32>
    %73 = arith.mulf %68, %70 : vector<8x32xf32>
    %74 = arith.addf %72, %73 : vector<8x32xf32>
    %75 = math.tanh %74 : vector<8x32xf32>
    %76 = arith.mulf %71, %75 : vector<8x32xf32>
    %c0_23 = arith.constant 0 : index
    %c0_24 = arith.constant 0 : index
    %77 = vector.load %arg9[%c0_23, %c0_24] : memref<64x32xf32, #tpu.memory_space<vmem>>, vector<8x32xf32>
    tpu.vector_store %arg9[%c0_23, %c0_24], %76 {strides = array<i32>} : memref<64x32xf32, #tpu.memory_space<vmem>>, vector<8x32xf32>,
    %78 = vector.extract_strided_slice %14 {offsets = [16, 0], sizes = [8, 128], strides = [1, 1]} : vector<64x128xf32> to vector<8x128xf32>
    %cst_25 = arith.constant dense<0.000000e+00> : vector<8x128xf32>
    %79 = tpu.matmul %56, %15, %cst_25 {dimension_numbers = #tpu.dot_dimension_numbers<[1], [0], [0], [1], [0, 0, 1, 1], [], []>} : vector<8x32xf32>, vector<32x128xf32>, vector<8x128xf32> -> vector<8x128xf32>
    %80 = arith.addf %78, %79 : vector<8x128xf32>
    %81 = arith.mulf %80, %8 : vector<8x128xf32>
    %82 = math.tanh %81 : vector<8x128xf32>
    %cst_26 = arith.constant 5.000000e-01 : f32
    %83 = vector.broadcast %cst_26 : f32 to vector<8x128xf32>
    %84 = arith.mulf %83, %82 : vector<8x128xf32>
    %cst_27 = arith.constant 5.000000e-01 : f32
    %85 = vector.broadcast %cst_27 : f32 to vector<8x128xf32>
    %86 = arith.addf %84, %85 : vector<8x128xf32>
    %87 = arith.select %5, %82, %86 : vector<8x128xi1>, vector<8x128xf32>
    %88 = vector.extract_strided_slice %87 {offsets = [0, 0], sizes = [8, 32], strides = [1, 1]} : vector<8x128xf32> to vector<8x32xf32>
    %89 = vector.extract_strided_slice %87 {offsets = [0, 32], sizes = [8, 32], strides = [1, 1]} : vector<8x128xf32> to vector<8x32xf32>
    %90 = vector.extract_strided_slice %87 {offsets = [0, 64], sizes = [8, 32], strides = [1, 1]} : vector<8x128xf32> to vector<8x32xf32>
    %91 = vector.extract_strided_slice %87 {offsets = [0, 96], sizes = [8, 32], strides = [1, 1]} : vector<8x128xf32> to vector<8x32xf32>
    %92 = arith.mulf %89, %54 : vector<8x32xf32>
    %93 = arith.mulf %88, %90 : vector<8x32xf32>
    %94 = arith.addf %92, %93 : vector<8x32xf32>
    %95 = math.tanh %94 : vector<8x32xf32>
    %96 = arith.mulf %91, %95 : vector<8x32xf32>
    %97 = tpu.concatenate %56, %76 in 1 : vector<8x32xf32>, vector<8x32xf32> -> vector<8x64xf32>
    %cst_28 = arith.constant dense<0.000000e+00> : vector<8x128xf32>
    %98 = tpu.matmul %97, %16, %cst_28 {dimension_numbers = #tpu.dot_dimension_numbers<[1], [0], [0], [1], [0, 0, 1, 1], [], []>} : vector<8x64xf32>, vector<64x128xf32>, vector<8x128xf32> -> vector<8x128xf32>
    %99 = vector.broadcast %17 : vector<1x128xf32> to vector<8x128xf32>
    %100 = arith.addf %98, %99 : vector<8x128xf32>
    %101 = arith.mulf %100, %8 : vector<8x128xf32>
    %102 = math.tanh %101 : vector<8x128xf32>
    %cst_29 = arith.constant 5.000000e-01 : f32
    %103 = vector.broadcast %cst_29 : f32 to vector<8x128xf32>
    %104 = arith.mulf %103, %102 : vector<8x128xf32>
    %cst_30 = arith.constant 5.000000e-01 : f32
    %105 = vector.broadcast %cst_30 : f32 to vector<8x128xf32>
    %106 = arith.addf %104, %105 : vector<8x128xf32>
    %107 = arith.select %5, %102, %106 : vector<8x128xi1>, vector<8x128xf32>
    %108 = vector.extract_strided_slice %107 {offsets = [0, 0], sizes = [8, 32], strides = [1, 1]} : vector<8x128xf32> to vector<8x32xf32>
    %109 = vector.extract_strided_slice %107 {offsets = [0, 32], sizes = [8, 32], strides = [1, 1]} : vector<8x128xf32> to vector<8x32xf32>
    %110 = vector.extract_strided_slice %107 {offsets = [0, 64], sizes = [8, 32], strides = [1, 1]} : vector<8x128xf32> to vector<8x32xf32>
    %111 = vector.extract_strided_slice %107 {offsets = [0, 96], sizes = [8, 32], strides = [1, 1]} : vector<8x128xf32> to vector<8x32xf32>
    %112 = arith.mulf %109, %74 : vector<8x32xf32>
    %113 = arith.mulf %108, %110 : vector<8x32xf32>
    %114 = arith.addf %112, %113 : vector<8x32xf32>
    %115 = math.tanh %114 : vector<8x32xf32>
    %116 = arith.mulf %111, %115 : vector<8x32xf32>
    %c8 = arith.constant 8 : index
    %c0_31 = arith.constant 0 : index
    %117 = vector.load %arg9[%c8, %c0_31] : memref<64x32xf32, #tpu.memory_space<vmem>>, vector<8x32xf32>
    tpu.vector_store %arg9[%c8, %c0_31], %116 {strides = array<i32>} : memref<64x32xf32, #tpu.memory_space<vmem>>, vector<8x32xf32>,
    %118 = vector.extract_strided_slice %14 {offsets = [24, 0], sizes = [8, 128], strides = [1, 1]} : vector<64x128xf32> to vector<8x128xf32>
    %cst_32 = arith.constant dense<0.000000e+00> : vector<8x128xf32>
    %119 = tpu.matmul %96, %15, %cst_32 {dimension_numbers = #tpu.dot_dimension_numbers<[1], [0], [0], [1], [0, 0, 1, 1], [], []>} : vector<8x32xf32>, vector<32x128xf32>, vector<8x128xf32> -> vector<8x128xf32>
    %120 = arith.addf %118, %119 : vector<8x128xf32>
    %121 = arith.mulf %120, %8 : vector<8x128xf32>
    %122 = math.tanh %121 : vector<8x128xf32>
    %cst_33 = arith.constant 5.000000e-01 : f32
    %123 = vector.broadcast %cst_33 : f32 to vector<8x128xf32>
    %124 = arith.mulf %123, %122 : vector<8x128xf32>
    %cst_34 = arith.constant 5.000000e-01 : f32
    %125 = vector.broadcast %cst_34 : f32 to vector<8x128xf32>
    %126 = arith.addf %124, %125 : vector<8x128xf32>
    %127 = arith.select %5, %122, %126 : vector<8x128xi1>, vector<8x128xf32>
    %128 = vector.extract_strided_slice %127 {offsets = [0, 0], sizes = [8, 32], strides = [1, 1]} : vector<8x128xf32> to vector<8x32xf32>
    %129 = vector.extract_strided_slice %127 {offsets = [0, 32], sizes = [8, 32], strides = [1, 1]} : vector<8x128xf32> to vector<8x32xf32>
    %130 = vector.extract_strided_slice %127 {offsets = [0, 64], sizes = [8, 32], strides = [1, 1]} : vector<8x128xf32> to vector<8x32xf32>
    %131 = vector.extract_strided_slice %127 {offsets = [0, 96], sizes = [8, 32], strides = [1, 1]} : vector<8x128xf32> to vector<8x32xf32>
    %132 = arith.mulf %129, %94 : vector<8x32xf32>
    %133 = arith.mulf %128, %130 : vector<8x32xf32>
    %134 = arith.addf %132, %133 : vector<8x32xf32>
    %135 = math.tanh %134 : vector<8x32xf32>
    %136 = arith.mulf %131, %135 : vector<8x32xf32>
    %137 = tpu.concatenate %96, %116 in 1 : vector<8x32xf32>, vector<8x32xf32> -> vector<8x64xf32>
    %cst_35 = arith.constant dense<0.000000e+00> : vector<8x128xf32>
    %138 = tpu.matmul %137, %16, %cst_35 {dimension_numbers = #tpu.dot_dimension_numbers<[1], [0], [0], [1], [0, 0, 1, 1], [], []>} : vector<8x64xf32>, vector<64x128xf32>, vector<8x128xf32> -> vector<8x128xf32>
    %139 = vector.broadcast %17 : vector<1x128xf32> to vector<8x128xf32>
    %140 = arith.addf %138, %139 : vector<8x128xf32>
    %141 = arith.mulf %140, %8 : vector<8x128xf32>
    %142 = math.tanh %141 : vector<8x128xf32>
    %cst_36 = arith.constant 5.000000e-01 : f32
    %143 = vector.broadcast %cst_36 : f32 to vector<8x128xf32>
    %144 = arith.mulf %143, %142 : vector<8x128xf32>
    %cst_37 = arith.constant 5.000000e-01 : f32
    %145 = vector.broadcast %cst_37 : f32 to vector<8x128xf32>
    %146 = arith.addf %144, %145 : vector<8x128xf32>
    %147 = arith.select %5, %142, %146 : vector<8x128xi1>, vector<8x128xf32>
    %148 = vector.extract_strided_slice %147 {offsets = [0, 0], sizes = [8, 32], strides = [1, 1]} : vector<8x128xf32> to vector<8x32xf32>
    %149 = vector.extract_strided_slice %147 {offsets = [0, 32], sizes = [8, 32], strides = [1, 1]} : vector<8x128xf32> to vector<8x32xf32>
    %150 = vector.extract_strided_slice %147 {offsets = [0, 64], sizes = [8, 32], strides = [1, 1]} : vector<8x128xf32> to vector<8x32xf32>
    %151 = vector.extract_strided_slice %147 {offsets = [0, 96], sizes = [8, 32], strides = [1, 1]} : vector<8x128xf32> to vector<8x32xf32>
    %152 = arith.mulf %149, %114 : vector<8x32xf32>
    %153 = arith.mulf %148, %150 : vector<8x32xf32>
    %154 = arith.addf %152, %153 : vector<8x32xf32>
    %155 = math.tanh %154 : vector<8x32xf32>
    %156 = arith.mulf %151, %155 : vector<8x32xf32>
    %c16 = arith.constant 16 : index
    %c0_38 = arith.constant 0 : index
    %157 = vector.load %arg9[%c16, %c0_38] : memref<64x32xf32, #tpu.memory_space<vmem>>, vector<8x32xf32>
    tpu.vector_store %arg9[%c16, %c0_38], %156 {strides = array<i32>} : memref<64x32xf32, #tpu.memory_space<vmem>>, vector<8x32xf32>,
    %158 = vector.extract_strided_slice %14 {offsets = [32, 0], sizes = [8, 128], strides = [1, 1]} : vector<64x128xf32> to vector<8x128xf32>
    %cst_39 = arith.constant dense<0.000000e+00> : vector<8x128xf32>
    %159 = tpu.matmul %136, %15, %cst_39 {dimension_numbers = #tpu.dot_dimension_numbers<[1], [0], [0], [1], [0, 0, 1, 1], [], []>} : vector<8x32xf32>, vector<32x128xf32>, vector<8x128xf32> -> vector<8x128xf32>
    %160 = arith.addf %158, %159 : vector<8x128xf32>
    %161 = arith.mulf %160, %8 : vector<8x128xf32>
    %162 = math.tanh %161 : vector<8x128xf32>
    %cst_40 = arith.constant 5.000000e-01 : f32
    %163 = vector.broadcast %cst_40 : f32 to vector<8x128xf32>
    %164 = arith.mulf %163, %162 : vector<8x128xf32>
    %cst_41 = arith.constant 5.000000e-01 : f32
    %165 = vector.broadcast %cst_41 : f32 to vector<8x128xf32>
    %166 = arith.addf %164, %165 : vector<8x128xf32>
    %167 = arith.select %5, %162, %166 : vector<8x128xi1>, vector<8x128xf32>
    %168 = vector.extract_strided_slice %167 {offsets = [0, 0], sizes = [8, 32], strides = [1, 1]} : vector<8x128xf32> to vector<8x32xf32>
    %169 = vector.extract_strided_slice %167 {offsets = [0, 32], sizes = [8, 32], strides = [1, 1]} : vector<8x128xf32> to vector<8x32xf32>
    %170 = vector.extract_strided_slice %167 {offsets = [0, 64], sizes = [8, 32], strides = [1, 1]} : vector<8x128xf32> to vector<8x32xf32>
    %171 = vector.extract_strided_slice %167 {offsets = [0, 96], sizes = [8, 32], strides = [1, 1]} : vector<8x128xf32> to vector<8x32xf32>
    %172 = arith.mulf %169, %134 : vector<8x32xf32>
    %173 = arith.mulf %168, %170 : vector<8x32xf32>
    %174 = arith.addf %172, %173 : vector<8x32xf32>
    %175 = math.tanh %174 : vector<8x32xf32>
    %176 = arith.mulf %171, %175 : vector<8x32xf32>
    %177 = tpu.concatenate %136, %156 in 1 : vector<8x32xf32>, vector<8x32xf32> -> vector<8x64xf32>
    %cst_42 = arith.constant dense<0.000000e+00> : vector<8x128xf32>
    %178 = tpu.matmul %177, %16, %cst_42 {dimension_numbers = #tpu.dot_dimension_numbers<[1], [0], [0], [1], [0, 0, 1, 1], [], []>} : vector<8x64xf32>, vector<64x128xf32>, vector<8x128xf32> -> vector<8x128xf32>
    %179 = vector.broadcast %17 : vector<1x128xf32> to vector<8x128xf32>
    %180 = arith.addf %178, %179 : vector<8x128xf32>
    %181 = arith.mulf %180, %8 : vector<8x128xf32>
    %182 = math.tanh %181 : vector<8x128xf32>
    %cst_43 = arith.constant 5.000000e-01 : f32
    %183 = vector.broadcast %cst_43 : f32 to vector<8x128xf32>
    %184 = arith.mulf %183, %182 : vector<8x128xf32>
    %cst_44 = arith.constant 5.000000e-01 : f32
    %185 = vector.broadcast %cst_44 : f32 to vector<8x128xf32>
    %186 = arith.addf %184, %185 : vector<8x128xf32>
    %187 = arith.select %5, %182, %186 : vector<8x128xi1>, vector<8x128xf32>
    %188 = vector.extract_strided_slice %187 {offsets = [0, 0], sizes = [8, 32], strides = [1, 1]} : vector<8x128xf32> to vector<8x32xf32>
    %189 = vector.extract_strided_slice %187 {offsets = [0, 32], sizes = [8, 32], strides = [1, 1]} : vector<8x128xf32> to vector<8x32xf32>
    %190 = vector.extract_strided_slice %187 {offsets = [0, 64], sizes = [8, 32], strides = [1, 1]} : vector<8x128xf32> to vector<8x32xf32>
    %191 = vector.extract_strided_slice %187 {offsets = [0, 96], sizes = [8, 32], strides = [1, 1]} : vector<8x128xf32> to vector<8x32xf32>
    %192 = arith.mulf %189, %154 : vector<8x32xf32>
    %193 = arith.mulf %188, %190 : vector<8x32xf32>
    %194 = arith.addf %192, %193 : vector<8x32xf32>
    %195 = math.tanh %194 : vector<8x32xf32>
    %196 = arith.mulf %191, %195 : vector<8x32xf32>
    %c24 = arith.constant 24 : index
    %c0_45 = arith.constant 0 : index
    %197 = vector.load %arg9[%c24, %c0_45] : memref<64x32xf32, #tpu.memory_space<vmem>>, vector<8x32xf32>
    tpu.vector_store %arg9[%c24, %c0_45], %196 {strides = array<i32>} : memref<64x32xf32, #tpu.memory_space<vmem>>, vector<8x32xf32>,
    %198 = vector.extract_strided_slice %14 {offsets = [40, 0], sizes = [8, 128], strides = [1, 1]} : vector<64x128xf32> to vector<8x128xf32>
    %cst_46 = arith.constant dense<0.000000e+00> : vector<8x128xf32>
    %199 = tpu.matmul %176, %15, %cst_46 {dimension_numbers = #tpu.dot_dimension_numbers<[1], [0], [0], [1], [0, 0, 1, 1], [], []>} : vector<8x32xf32>, vector<32x128xf32>, vector<8x128xf32> -> vector<8x128xf32>
    %200 = arith.addf %198, %199 : vector<8x128xf32>
    %201 = arith.mulf %200, %8 : vector<8x128xf32>
    %202 = math.tanh %201 : vector<8x128xf32>
    %cst_47 = arith.constant 5.000000e-01 : f32
    %203 = vector.broadcast %cst_47 : f32 to vector<8x128xf32>
    %204 = arith.mulf %203, %202 : vector<8x128xf32>
    %cst_48 = arith.constant 5.000000e-01 : f32
    %205 = vector.broadcast %cst_48 : f32 to vector<8x128xf32>
    %206 = arith.addf %204, %205 : vector<8x128xf32>
    %207 = arith.select %5, %202, %206 : vector<8x128xi1>, vector<8x128xf32>
    %208 = vector.extract_strided_slice %207 {offsets = [0, 0], sizes = [8, 32], strides = [1, 1]} : vector<8x128xf32> to vector<8x32xf32>
    %209 = vector.extract_strided_slice %207 {offsets = [0, 32], sizes = [8, 32], strides = [1, 1]} : vector<8x128xf32> to vector<8x32xf32>
    %210 = vector.extract_strided_slice %207 {offsets = [0, 64], sizes = [8, 32], strides = [1, 1]} : vector<8x128xf32> to vector<8x32xf32>
    %211 = vector.extract_strided_slice %207 {offsets = [0, 96], sizes = [8, 32], strides = [1, 1]} : vector<8x128xf32> to vector<8x32xf32>
    %212 = arith.mulf %209, %174 : vector<8x32xf32>
    %213 = arith.mulf %208, %210 : vector<8x32xf32>
    %214 = arith.addf %212, %213 : vector<8x32xf32>
    %215 = math.tanh %214 : vector<8x32xf32>
    %216 = arith.mulf %211, %215 : vector<8x32xf32>
    %217 = tpu.concatenate %176, %196 in 1 : vector<8x32xf32>, vector<8x32xf32> -> vector<8x64xf32>
    %cst_49 = arith.constant dense<0.000000e+00> : vector<8x128xf32>
    %218 = tpu.matmul %217, %16, %cst_49 {dimension_numbers = #tpu.dot_dimension_numbers<[1], [0], [0], [1], [0, 0, 1, 1], [], []>} : vector<8x64xf32>, vector<64x128xf32>, vector<8x128xf32> -> vector<8x128xf32>
    %219 = vector.broadcast %17 : vector<1x128xf32> to vector<8x128xf32>
    %220 = arith.addf %218, %219 : vector<8x128xf32>
    %221 = arith.mulf %220, %8 : vector<8x128xf32>
    %222 = math.tanh %221 : vector<8x128xf32>
    %cst_50 = arith.constant 5.000000e-01 : f32
    %223 = vector.broadcast %cst_50 : f32 to vector<8x128xf32>
    %224 = arith.mulf %223, %222 : vector<8x128xf32>
    %cst_51 = arith.constant 5.000000e-01 : f32
    %225 = vector.broadcast %cst_51 : f32 to vector<8x128xf32>
    %226 = arith.addf %224, %225 : vector<8x128xf32>
    %227 = arith.select %5, %222, %226 : vector<8x128xi1>, vector<8x128xf32>
    %228 = vector.extract_strided_slice %227 {offsets = [0, 0], sizes = [8, 32], strides = [1, 1]} : vector<8x128xf32> to vector<8x32xf32>
    %229 = vector.extract_strided_slice %227 {offsets = [0, 32], sizes = [8, 32], strides = [1, 1]} : vector<8x128xf32> to vector<8x32xf32>
    %230 = vector.extract_strided_slice %227 {offsets = [0, 64], sizes = [8, 32], strides = [1, 1]} : vector<8x128xf32> to vector<8x32xf32>
    %231 = vector.extract_strided_slice %227 {offsets = [0, 96], sizes = [8, 32], strides = [1, 1]} : vector<8x128xf32> to vector<8x32xf32>
    %232 = arith.mulf %229, %194 : vector<8x32xf32>
    %233 = arith.mulf %228, %230 : vector<8x32xf32>
    %234 = arith.addf %232, %233 : vector<8x32xf32>
    %235 = math.tanh %234 : vector<8x32xf32>
    %236 = arith.mulf %231, %235 : vector<8x32xf32>
    %c32 = arith.constant 32 : index
    %c0_52 = arith.constant 0 : index
    %237 = vector.load %arg9[%c32, %c0_52] : memref<64x32xf32, #tpu.memory_space<vmem>>, vector<8x32xf32>
    tpu.vector_store %arg9[%c32, %c0_52], %236 {strides = array<i32>} : memref<64x32xf32, #tpu.memory_space<vmem>>, vector<8x32xf32>,
    %238 = vector.extract_strided_slice %14 {offsets = [48, 0], sizes = [8, 128], strides = [1, 1]} : vector<64x128xf32> to vector<8x128xf32>
    %cst_53 = arith.constant dense<0.000000e+00> : vector<8x128xf32>
    %239 = tpu.matmul %216, %15, %cst_53 {dimension_numbers = #tpu.dot_dimension_numbers<[1], [0], [0], [1], [0, 0, 1, 1], [], []>} : vector<8x32xf32>, vector<32x128xf32>, vector<8x128xf32> -> vector<8x128xf32>
    %240 = arith.addf %238, %239 : vector<8x128xf32>
    %241 = arith.mulf %240, %8 : vector<8x128xf32>
    %242 = math.tanh %241 : vector<8x128xf32>
    %cst_54 = arith.constant 5.000000e-01 : f32
    %243 = vector.broadcast %cst_54 : f32 to vector<8x128xf32>
    %244 = arith.mulf %243, %242 : vector<8x128xf32>
    %cst_55 = arith.constant 5.000000e-01 : f32
    %245 = vector.broadcast %cst_55 : f32 to vector<8x128xf32>
    %246 = arith.addf %244, %245 : vector<8x128xf32>
    %247 = arith.select %5, %242, %246 : vector<8x128xi1>, vector<8x128xf32>
    %248 = vector.extract_strided_slice %247 {offsets = [0, 0], sizes = [8, 32], strides = [1, 1]} : vector<8x128xf32> to vector<8x32xf32>
    %249 = vector.extract_strided_slice %247 {offsets = [0, 32], sizes = [8, 32], strides = [1, 1]} : vector<8x128xf32> to vector<8x32xf32>
    %250 = vector.extract_strided_slice %247 {offsets = [0, 64], sizes = [8, 32], strides = [1, 1]} : vector<8x128xf32> to vector<8x32xf32>
    %251 = vector.extract_strided_slice %247 {offsets = [0, 96], sizes = [8, 32], strides = [1, 1]} : vector<8x128xf32> to vector<8x32xf32>
    %252 = arith.mulf %249, %214 : vector<8x32xf32>
    %253 = arith.mulf %248, %250 : vector<8x32xf32>
    %254 = arith.addf %252, %253 : vector<8x32xf32>
    %255 = math.tanh %254 : vector<8x32xf32>
    %256 = arith.mulf %251, %255 : vector<8x32xf32>
    %257 = tpu.concatenate %216, %236 in 1 : vector<8x32xf32>, vector<8x32xf32> -> vector<8x64xf32>
    %cst_56 = arith.constant dense<0.000000e+00> : vector<8x128xf32>
    %258 = tpu.matmul %257, %16, %cst_56 {dimension_numbers = #tpu.dot_dimension_numbers<[1], [0], [0], [1], [0, 0, 1, 1], [], []>} : vector<8x64xf32>, vector<64x128xf32>, vector<8x128xf32> -> vector<8x128xf32>
    %259 = vector.broadcast %17 : vector<1x128xf32> to vector<8x128xf32>
    %260 = arith.addf %258, %259 : vector<8x128xf32>
    %261 = arith.mulf %260, %8 : vector<8x128xf32>
    %262 = math.tanh %261 : vector<8x128xf32>
    %cst_57 = arith.constant 5.000000e-01 : f32
    %263 = vector.broadcast %cst_57 : f32 to vector<8x128xf32>
    %264 = arith.mulf %263, %262 : vector<8x128xf32>
    %cst_58 = arith.constant 5.000000e-01 : f32
    %265 = vector.broadcast %cst_58 : f32 to vector<8x128xf32>
    %266 = arith.addf %264, %265 : vector<8x128xf32>
    %267 = arith.select %5, %262, %266 : vector<8x128xi1>, vector<8x128xf32>
    %268 = vector.extract_strided_slice %267 {offsets = [0, 0], sizes = [8, 32], strides = [1, 1]} : vector<8x128xf32> to vector<8x32xf32>
    %269 = vector.extract_strided_slice %267 {offsets = [0, 32], sizes = [8, 32], strides = [1, 1]} : vector<8x128xf32> to vector<8x32xf32>
    %270 = vector.extract_strided_slice %267 {offsets = [0, 64], sizes = [8, 32], strides = [1, 1]} : vector<8x128xf32> to vector<8x32xf32>
    %271 = vector.extract_strided_slice %267 {offsets = [0, 96], sizes = [8, 32], strides = [1, 1]} : vector<8x128xf32> to vector<8x32xf32>
    %272 = arith.mulf %269, %234 : vector<8x32xf32>
    %273 = arith.mulf %268, %270 : vector<8x32xf32>
    %274 = arith.addf %272, %273 : vector<8x32xf32>
    %275 = math.tanh %274 : vector<8x32xf32>
    %276 = arith.mulf %271, %275 : vector<8x32xf32>
    %c40 = arith.constant 40 : index
    %c0_59 = arith.constant 0 : index
    %277 = vector.load %arg9[%c40, %c0_59] : memref<64x32xf32, #tpu.memory_space<vmem>>, vector<8x32xf32>
    tpu.vector_store %arg9[%c40, %c0_59], %276 {strides = array<i32>} : memref<64x32xf32, #tpu.memory_space<vmem>>, vector<8x32xf32>,
    %278 = vector.extract_strided_slice %14 {offsets = [56, 0], sizes = [8, 128], strides = [1, 1]} : vector<64x128xf32> to vector<8x128xf32>
    %cst_60 = arith.constant dense<0.000000e+00> : vector<8x128xf32>
    %279 = tpu.matmul %256, %15, %cst_60 {dimension_numbers = #tpu.dot_dimension_numbers<[1], [0], [0], [1], [0, 0, 1, 1], [], []>} : vector<8x32xf32>, vector<32x128xf32>, vector<8x128xf32> -> vector<8x128xf32>
    %280 = arith.addf %278, %279 : vector<8x128xf32>
    %281 = arith.mulf %280, %8 : vector<8x128xf32>
    %282 = math.tanh %281 : vector<8x128xf32>
    %cst_61 = arith.constant 5.000000e-01 : f32
    %283 = vector.broadcast %cst_61 : f32 to vector<8x128xf32>
    %284 = arith.mulf %283, %282 : vector<8x128xf32>
    %cst_62 = arith.constant 5.000000e-01 : f32
    %285 = vector.broadcast %cst_62 : f32 to vector<8x128xf32>
    %286 = arith.addf %284, %285 : vector<8x128xf32>
    %287 = arith.select %5, %282, %286 : vector<8x128xi1>, vector<8x128xf32>
    %288 = vector.extract_strided_slice %287 {offsets = [0, 0], sizes = [8, 32], strides = [1, 1]} : vector<8x128xf32> to vector<8x32xf32>
    %289 = vector.extract_strided_slice %287 {offsets = [0, 32], sizes = [8, 32], strides = [1, 1]} : vector<8x128xf32> to vector<8x32xf32>
    %290 = vector.extract_strided_slice %287 {offsets = [0, 64], sizes = [8, 32], strides = [1, 1]} : vector<8x128xf32> to vector<8x32xf32>
    %291 = vector.extract_strided_slice %287 {offsets = [0, 96], sizes = [8, 32], strides = [1, 1]} : vector<8x128xf32> to vector<8x32xf32>
    %292 = arith.mulf %289, %254 : vector<8x32xf32>
    %293 = arith.mulf %288, %290 : vector<8x32xf32>
    %294 = arith.addf %292, %293 : vector<8x32xf32>
    %295 = math.tanh %294 : vector<8x32xf32>
    %296 = arith.mulf %291, %295 : vector<8x32xf32>
    %297 = tpu.concatenate %256, %276 in 1 : vector<8x32xf32>, vector<8x32xf32> -> vector<8x64xf32>
    %cst_63 = arith.constant dense<0.000000e+00> : vector<8x128xf32>
    %298 = tpu.matmul %297, %16, %cst_63 {dimension_numbers = #tpu.dot_dimension_numbers<[1], [0], [0], [1], [0, 0, 1, 1], [], []>} : vector<8x64xf32>, vector<64x128xf32>, vector<8x128xf32> -> vector<8x128xf32>
    %299 = vector.broadcast %17 : vector<1x128xf32> to vector<8x128xf32>
    %300 = arith.addf %298, %299 : vector<8x128xf32>
    %301 = arith.mulf %300, %8 : vector<8x128xf32>
    %302 = math.tanh %301 : vector<8x128xf32>
    %cst_64 = arith.constant 5.000000e-01 : f32
    %303 = vector.broadcast %cst_64 : f32 to vector<8x128xf32>
    %304 = arith.mulf %303, %302 : vector<8x128xf32>
    %cst_65 = arith.constant 5.000000e-01 : f32
    %305 = vector.broadcast %cst_65 : f32 to vector<8x128xf32>
    %306 = arith.addf %304, %305 : vector<8x128xf32>
    %307 = arith.select %5, %302, %306 : vector<8x128xi1>, vector<8x128xf32>
    %308 = vector.extract_strided_slice %307 {offsets = [0, 0], sizes = [8, 32], strides = [1, 1]} : vector<8x128xf32> to vector<8x32xf32>
    %309 = vector.extract_strided_slice %307 {offsets = [0, 32], sizes = [8, 32], strides = [1, 1]} : vector<8x128xf32> to vector<8x32xf32>
    %310 = vector.extract_strided_slice %307 {offsets = [0, 64], sizes = [8, 32], strides = [1, 1]} : vector<8x128xf32> to vector<8x32xf32>
    %311 = vector.extract_strided_slice %307 {offsets = [0, 96], sizes = [8, 32], strides = [1, 1]} : vector<8x128xf32> to vector<8x32xf32>
    %312 = arith.mulf %309, %274 : vector<8x32xf32>
    %313 = arith.mulf %308, %310 : vector<8x32xf32>
    %314 = arith.addf %312, %313 : vector<8x32xf32>
    %315 = math.tanh %314 : vector<8x32xf32>
    %316 = arith.mulf %311, %315 : vector<8x32xf32>
    %c48 = arith.constant 48 : index
    %c0_66 = arith.constant 0 : index
    %317 = vector.load %arg9[%c48, %c0_66] : memref<64x32xf32, #tpu.memory_space<vmem>>, vector<8x32xf32>
    tpu.vector_store %arg9[%c48, %c0_66], %316 {strides = array<i32>} : memref<64x32xf32, #tpu.memory_space<vmem>>, vector<8x32xf32>,
    %318 = tpu.concatenate %296, %316 in 1 : vector<8x32xf32>, vector<8x32xf32> -> vector<8x64xf32>
    %cst_67 = arith.constant dense<0.000000e+00> : vector<8x128xf32>
    %319 = tpu.matmul %318, %16, %cst_67 {dimension_numbers = #tpu.dot_dimension_numbers<[1], [0], [0], [1], [0, 0, 1, 1], [], []>} : vector<8x64xf32>, vector<64x128xf32>, vector<8x128xf32> -> vector<8x128xf32>
    %320 = vector.broadcast %17 : vector<1x128xf32> to vector<8x128xf32>
    %321 = arith.addf %319, %320 : vector<8x128xf32>
    %322 = arith.mulf %321, %8 : vector<8x128xf32>
    %323 = math.tanh %322 : vector<8x128xf32>
    %cst_68 = arith.constant 5.000000e-01 : f32
    %324 = vector.broadcast %cst_68 : f32 to vector<8x128xf32>
    %325 = arith.mulf %324, %323 : vector<8x128xf32>
    %cst_69 = arith.constant 5.000000e-01 : f32
    %326 = vector.broadcast %cst_69 : f32 to vector<8x128xf32>
    %327 = arith.addf %325, %326 : vector<8x128xf32>
    %328 = arith.select %5, %323, %327 : vector<8x128xi1>, vector<8x128xf32>
    %329 = vector.extract_strided_slice %328 {offsets = [0, 0], sizes = [8, 32], strides = [1, 1]} : vector<8x128xf32> to vector<8x32xf32>
    %330 = vector.extract_strided_slice %328 {offsets = [0, 32], sizes = [8, 32], strides = [1, 1]} : vector<8x128xf32> to vector<8x32xf32>
    %331 = vector.extract_strided_slice %328 {offsets = [0, 64], sizes = [8, 32], strides = [1, 1]} : vector<8x128xf32> to vector<8x32xf32>
    %332 = vector.extract_strided_slice %328 {offsets = [0, 96], sizes = [8, 32], strides = [1, 1]} : vector<8x128xf32> to vector<8x32xf32>
    %333 = arith.mulf %330, %314 : vector<8x32xf32>
    %334 = arith.mulf %329, %331 : vector<8x32xf32>
    %335 = arith.addf %333, %334 : vector<8x32xf32>
    %336 = math.tanh %335 : vector<8x32xf32>
    %337 = arith.mulf %332, %336 : vector<8x32xf32>
    %c56 = arith.constant 56 : index
    %c0_70 = arith.constant 0 : index
    %338 = vector.load %arg9[%c56, %c0_70] : memref<64x32xf32, #tpu.memory_space<vmem>>, vector<8x32xf32>
    tpu.vector_store %arg9[%c56, %c0_70], %337 {strides = array<i32>} : memref<64x32xf32, #tpu.memory_space<vmem>>, vector<8x32xf32>,
    %c0_71 = arith.constant 0 : index
    %c0_72 = arith.constant 0 : index
    %339 = vector.load %arg9[%c0_71, %c0_72] : memref<64x32xf32, #tpu.memory_space<vmem>>, vector<64x32xf32>
    %cst_73 = arith.constant 0.000000e+00 : f32
    %340 = vector.broadcast %cst_73 : f32 to vector<64x32xf32>
    %341 = arith.maximumf %339, %340 : vector<64x32xf32>
    %c0_74 = arith.constant 0 : index
    %c0_75 = arith.constant 0 : index
    %342 = vector.load %arg6[%c0_74, %c0_75] : memref<32x128xf32, #tpu.memory_space<vmem>>, vector<32x128xf32>
    %cst_76 = arith.constant dense<0.000000e+00> : vector<64x128xf32>
    %343 = tpu.matmul %341, %342, %cst_76 {dimension_numbers = #tpu.dot_dimension_numbers<[1], [0], [0], [1], [0, 0, 1, 1], [], []>} : vector<64x32xf32>, vector<32x128xf32>, vector<64x128xf32> -> vector<64x128xf32>
    %c0_77 = arith.constant 0 : index
    %c0_78 = arith.constant 0 : index
    %344 = vector.load %arg7[%c0_77, %c0_78] : memref<1x128xf32, #tpu.memory_space<vmem>>, vector<1x128xf32>
    %345 = vector.broadcast %344 : vector<1x128xf32> to vector<64x128xf32>
    %346 = arith.addf %343, %345 : vector<64x128xf32>
    %cst_79 = arith.constant dense<0xFF800000> : vector<64xf32>
    %347 = vector.multi_reduction <maximumf>, %346, %cst_79 [1] : vector<64x128xf32> to vector<64xf32>
    %348 = vector.shape_cast %347 : vector<64xf32> to vector<64x1xf32>
    %349 = vector.broadcast %348 : vector<64x1xf32> to vector<64x128xf32>
    %350 = arith.subf %346, %349 : vector<64x128xf32>
    %351 = math.exp %350 : vector<64x128xf32>
    %cst_80 = arith.constant dense<0.000000e+00> : vector<64xf32>
    %352 = vector.multi_reduction <add>, %351, %cst_80 [1] : vector<64x128xf32> to vector<64xf32>
    %353 = vector.shape_cast %352 : vector<64xf32> to vector<64x1xf32>
    %354 = tpu.reciprocal %353 : vector<64x1xf32> -> vector<64x1xf32>
    %355 = vector.broadcast %354 : vector<64x1xf32> to vector<64x128xf32>
    %356 = arith.mulf %351, %355 : vector<64x128xf32>
    %c0_81 = arith.constant 0 : index
    %c0_82 = arith.constant 0 : index
    %357 = vector.load %arg8[%c0_81, %c0_82] : memref<64x128xf32, #tpu.memory_space<vmem>>, vector<64x128xf32>
    tpu.vector_store %arg8[%c0_81, %c0_82], %356 {strides = array<i32>} : memref<64x128xf32, #tpu.memory_space<vmem>>, vector<64x128xf32>,
    return
  }
}

</mosaic_0001>

<bundles_post_ra>
// kernel: lstm_igt_forward.1
= control target key start
LH: loop header
LB: loop body
LE: loop exit
PB: predicated region body
PF: predicated region fallthrough
CT: control target
= control target key end

     0   :  { %vm76_vm0 = vcmask 1043456   ;;  %vm51_vm1 = vcmask 31744   ;;  %v2764_v0 = vmov 0.0|0.0   ;;  %vm2765_vm2 = vmmov 0   ;;  %s2769_s19 = smov 32   ;;  %s3321_s2 = inlined_call_operand.vmem [shape: f32[32,128], index: 2, kind: input, shape index: {}]   ;;  %s3322_s1 = inlined_call_operand.vmem [shape: f32[4,128], index: 1, kind: input, shape index: {}]   ;;  %s3323_s0 = inlined_call_operand.vmem [shape: f32[64,4], index: 0, kind: input, shape index: {}]   ;;  %s3324_s3 = inlined_call_operand.vmem [shape: f32[1,128], index: 3, kind: input, shape index: {}]   ;;  %s3325_s4 = inlined_call_operand.vmem [shape: f32[64,128], index: 4, kind: input, shape index: {}]   ;;  %s3326_s5 = inlined_call_operand.vmem [shape: f32[1,128], index: 5, kind: input, shape index: {}]   ;;  %s3327_s6 = inlined_call_operand.vmem [shape: f32[32,128], index: 6, kind: input, shape index: {}]   ;;  %s3328_s7 = inlined_call_operand.vmem [shape: f32[1,128], index: 7, kind: input, shape index: {}]   ;;  %s3329_s8 = inlined_call_operand.vmem [shape: f32[64,128], index: 8, kind: output, shape index: {}]  }
   0x1   :  { %2510 = vmatprep.subr.bf16.mxu1 %v2764_v0  ;;  %v185_v1 = vld [vmem:[%s3321_s2] sm:$0xff]  ;;  %v186_v2 = vld [vmem:[%s3321_s2 + $0x8] sm:$0xff]  ;;  %v187_v7 = vld [vmem:[%s3321_s2 + $0x10] sm:$0xff]  ;;  %v2766_v8 = vmov 0.0   ;;  %v29_v11 = vlaneseq  ;;  %v2767_v18 = vmov 0.5   ;;  %vm198_vm6 = vcmask 261120  }
   0x2   :  { %v43_v3 = vld [vmem:[%s3322_s1] sm:$0xf]  ;;  %v2825_v4 = vpack.c.bf16 %v186_v2, %v185_v1  ;;  %v36_v6 = vld [vmem:[%s3323_s0 + $0x8] sm:$0xff]  ;;  %2258 = vmatprep.mubr.msk.f32.mxu1 %vm2765_vm2, %v2766_v8  ;;  %v188_v9 = vld [vmem:[%s3321_s2 + $0x18] sm:$0xff]  ;;  %vm401_vm7 = vcmask 523264  }
   0x3   :  { %2236 = vmatprep.subr.msk.mxu0 %vm76_vm0, %v43_v3  ;;  %v35_v5 = vld [vmem:[%s3323_s0] sm:$0xff]  ;;  %v2846_v10 = vpack.c.bf16 %v188_v9, %v187_v7  ;;  %v30_v12 = vand.u32 127, %v29_v11  ;;  %v37_v33 = vld [vmem:[%s3323_s0 + $0x10] sm:$0xff]  ;;  %v38_v34 = vld [vmem:[%s3323_s0 + $0x18] sm:$0xff] }
   0x4   :  { %2237 = vmatpush3.msk.msra.mxu0 %vm76_vm0, %v43_v3  ;;  %2238 = vmatprep.mubr.msk.f32.mxu0 %vm51_vm1, %v35_v5  ;;  %v2864_v14 = vld [vmem:[%s3324_s3] ss:$0 sm:$0xff]  ;;  %s2768_s3 = smov 64   ;;  %v190_v37 = vld [vmem:[%s3325_s4 + $0x8] sm:$0xff]  ;;  %v191_v38 = vld [vmem:[%s3325_s4 + $0x10] sm:$0xff] }
   0x5   :  { %2512 = vmatpush3.bf16.msra.mxu1 %v2825_v4  ;;  %2239 = vmatmul.mubr.msk.f32.vlgmr.msra.gmra.mrb[0].mxu0 %vm51_vm1, %v36_v6  ;;  %vm31_vm3 = vcmp.ge.s32.totalorder %v30_v12, 64  ;;  %vm32_vm4 = vcmp.lt.s32.totalorder %v30_v12, 96  ;;  %v39_v35 = vld [vmem:[%s3323_s0 + $0x20] sm:$0xff]  ;;  %v192_v40 = vld [vmem:[%s3325_s4 + $0x18] sm:$0xff]  ;;  %v40_v41 = vld [vmem:[%s3323_s0 + $0x28] sm:$0xff] }
   0x6   :  { %2513 = vmatprep.subr.bf16.mxu1 %v2764_v0  ;;  %2522 = vmatprep.subr.bf16.mxu0 %v2764_v0  ;;  %vm2867_vm5 = vmand %vm31_vm3, %vm32_vm4  ;;  %v189_v36 = vld [vmem:[%s3325_s4] sm:$0xff]  ;;  %v2913_v42 = vpack.c.bf16 %v192_v40, %v191_v38  ;;  %v41_v43 = vld [vmem:[%s3323_s0 + $0x30] sm:$0xff] }
   0x7   :  { %v2873_v19 = vsel %vm2867_vm5, 1.0, %v2767_v18  ;;  %2241 = vmatprep.mubr.msk.f32.mxu0 %vm51_vm1, %v37_v33  ;;  %v2902_v39 = vpack.c.bf16 %v190_v37, %v189_v36  ;;  %v193_v44 = vld [vmem:[%s3325_s4 + $0x20] sm:$0xff]  ;;  %v194_v45 = vld [vmem:[%s3325_s4 + $0x28] sm:$0xff]  ;;  %v42_v46 = vld [vmem:[%s3323_s0 + $0x38] sm:$0xff] }
   0x8   :  { %v2931_v47 = vpack.c.bf16 %v194_v45, %v193_v44  ;;  %v195_v48 = vld [vmem:[%s3325_s4 + $0x30] sm:$0xff]  ;;  %v196_v49 = vld [vmem:[%s3325_s4 + $0x38] sm:$0xff]  ;;  %v2983_v63 = vld [vmem:[%s3326_s5] ss:$0 sm:$0xff] }
   0x9   :  { %2515 = vmatpush3.bf16.msra.mxu1 %v2846_v10  ;;  %2242 = vmatmul.mubr.msk.f32.gmra.mrb[2].mxu0 %vm51_vm1, %v38_v34  ;;  %v2945_v51 = vpack.c.bf16 %v196_v49, %v195_v48 }
   0xa   :  { %2516 = vmatprep.subr.bf16.mxu1 %v2764_v0  ;;  %2244 = vmatprep.mubr.msk.f32.mxu0 %vm51_vm1, %v39_v35 }
   0xb   :  { %2524 = vmatpush3.bf16.msra.mxu0 %v2902_v39 }
   0xc   :  { %2259 = vmatmul.mubr.f32.vlgmr.msra.gmra.mrb[0].mxu1 %v2766_v8  ;;  %2525 = vmatprep.subr.bf16.mxu0 %v2764_v0 }
   0xd   :  { %2518 = vmatpush3.bf16.msra.mxu1 %v2825_v4  ;;  %2269 = vmatprep.mubr.msk.f32.mxu1 %vm2765_vm2, %v2766_v8 }
   0xe   :  { %2519 = vmatprep.subr.bf16.mxu1 %v2764_v0  ;;  %2245 = vmatmul.mubr.msk.f32.gmra.mrb[4].mxu0 %vm51_vm1, %v40_v41 }
   0xf   :  { %2247 = vmatprep.mubr.msk.f32.mxu0 %vm51_vm1, %v41_v43  ;;  %2527 = vmatpush3.bf16.msra.mxu0 %v2913_v42 }
  0x10   :  { %2528 = vmatprep.subr.bf16.mxu0 %v2764_v0 }
  0x11   :  { %2521 = vmatpush3.bf16.msra.mxu1 %v2846_v10 }
  0x12   :  { %2552 = vmatprep.subr.bf16.mxu1 %v2764_v0  ;;  %2248 = vmatmul.mubr.msk.f32.gmra.mrb[6].mxu0 %vm51_vm1, %v42_v46 }
  0x13   :  { %2288 = vmatprep.mubr.msk.f32.mxu0 %vm2765_vm2, %v2766_v8  ;;  %2530 = vmatpush3.bf16.msra.mxu0 %v2931_v47 }
  0x14   :  { %2531 = vmatprep.subr.bf16.mxu0 %v2764_v0 }
  0x17   :  { %2533 = vmatpush3.bf16.msra.mxu0 %v2945_v51 }
  0x18   :  { %2534 = vmatprep.subr.bf16.mxu0 %v2764_v0 }
  0xd8   :  { %v2859_v13 = vpop.f32.mrb[0].mxu0 }
  0xd9   :  { %v146_v15 = vpop.f32.mrb[1].mxu0  ;;  %v152_v62 = vadd.f32 %v2859_v13, %v2864_v14 }
  0xda   :  { %v147_v16 = vadd.f32 %v2864_v14, %v146_v15 }
  0xdc   :  { %v2951_v54 = vpop.f32.mrb[2].mxu0 }
  0xdd   :  { %v2953_v55 = vpop.f32.mrb[3].mxu0 }
  0xde   :  { %v157_v44 = vadd.f32 %v2864_v14, %v2953_v55 }
  0xdf   :  { %v268_v20 = vpop.f32.mrb[0].mxu1 }
  0xe0   :  { %v272_v21 = vadd.f32 %v268_v20, %v147_v16  ;;  %v2260_v22 = vpop.f32.mrb[1].mxu1 }
  0xe1   :  { %v2955_v56 = vpop.f32.mrb[4].mxu0 }
  0xe2   :  { %v273_v23 = vmul.f32 %v272_v21, %v2873_v19  ;;  %v2957_v57 = vpop.f32.mrb[5].mxu0 }
  0xe4   :  { %2668 = vtanh.f32 %v273_v23 }
  0xe5   :  { %v2959_v58 = vpop.f32.mrb[6].mxu0 }
  0xe6   :  { %v2961_v59 = vpop.f32.mrb[7].mxu0 }
  0xee   :  { %v2669_v24 = vpop.eup %2668 }
  0xef   :  { %v275_v25 = vmul.f32 0.5, %v2669_v24 }
  0xf1   :  { %v276_v26 = vadd.f32 0.5, %v275_v25 }
  0xf3   :  { %v277_v27 = vsel %vm2867_vm5, %v2669_v24, %v276_v26 }
  0xf4   :  { %280 = vrot.lane.b32.xlu0 %v277_v27, %s2768_s3  ;;  %v278_v30 = vmul.f32 0.0, %v277_v27 }
 0x166   :  { %v281_v28 = vpop.permute.xlu0 %280 }
 0x167   :  { %v283_v29 = vmul.f32 %v281_v28, %v277_v27 }
 0x169   :  { %285 = vrot.lane.b32.xlu0 %v283_v29, %s2769_s19 }
 0x1db   :  { %v286_v31 = vpop.permute.xlu0 %285 }
 0x1dc   :  { %v2880_v32 = vadd.f32 %v286_v31, %v278_v30 }
 0x1de   :  { %2670 = vtanh.f32 %v2880_v32 }
 0x1e8   :  { %v2671_v50 = vpop.eup %2670 }
 0x1e9   :  { %291 = vrot.lane.b32.xlu1 %v2671_v50, %s2768_s3 }
 0x25b   :  { %v292_v52 = vpop.permute.xlu1 %291 }
 0x25c   :  { %v294_v53 = vmul.f32 %v292_v52, %v277_v27 }
 0x25e   :  { %296 = vrot.lane.b32.xlu1 %v294_v53, %s2769_s19 }
 0x2d0   :  { %v297_v60 = vpop.permute.xlu1 %296 }
 0x2d1   :  { %v394_v61 = vsel %vm198_vm6, %v297_v60, 0.0  ;;  %2270 = vmatmul.mubr.msk.f32.vlgmr.msra.gmra.mrb[2].mxu1 %vm198_vm6, %v297_v60 }
 0x2d2   :  { %2289 = vmatmul.mubr.msk.f32.vlgmr.msra.gmra.mrb[8].mxu0 %vm401_vm7, %v394_v61  ;;  %2554 = vmatpush3.bf16.msra.mxu1 %v2825_v4 }
 0x2d3   :  { %2536 = vmatpush3.bf16.msra.mxu0 %v2825_v4  ;;  %2299 = vmatprep.mubr.msk.f32.mxu0 %vm2765_vm2, %v2766_v8 }
 0x2d4   :  { %2537 = vmatprep.subr.bf16.mxu0 %v2764_v0  ;;  %2555 = vmatprep.subr.bf16.mxu1 %v2764_v0 }
 0x2d5   :  { %2329 = vmatprep.mubr.msk.f32.mxu1 %vm2765_vm2, %v2766_v8 }
 0x2d6   :  { %2557 = vmatpush3.bf16.msra.mxu1 %v2846_v10 }
 0x2d7   :  { %2539 = vmatpush3.bf16.msra.mxu0 %v2846_v10  ;;  %2558 = vmatprep.subr.bf16.mxu1 %v2764_v0 }
 0x2d8   :  { %2540 = vmatprep.subr.bf16.mxu0 %v2764_v0 }
 0x3a4   :  { %v366_v1 = vpop.f32.mrb[2].mxu1 }
 0x3a5   :  { %v370_v2 = vadd.f32 %v366_v1, %v152_v62  ;;  %v2271_v3 = vpop.f32.mrb[3].mxu1  ;;  %v471_v5 = vpop.f32.mrb[8].mxu0 }
 0x3a6   :  { %v472_v6 = vadd.f32 %v2983_v63, %v471_v5  ;;  %v2290_v7 = vpop.f32.mrb[9].mxu0 }
 0x3a7   :  { %v371_v9 = vmul.f32 %v370_v2, %v2873_v19 }
 0x3a8   :  { %v475_v11 = vmul.f32 %v472_v6, %v2873_v19 }
 0x3a9   :  { %2672 = vtanh.f32 %v371_v9 }
 0x3aa   :  { %2674 = vtanh.f32 %v475_v11 }
 0x3b3   :  { %v2673_v12 = vpop.eup %2672 }
 0x3b4   :  { %v2675_v13 = vpop.eup %2674  ;;  %v373_v15 = vmul.f32 0.5, %v2673_v12 }
 0x3b5   :  { %v477_v16 = vmul.f32 0.5, %v2675_v13 }
 0x3b6   :  { %v374_v18 = vadd.f32 0.5, %v373_v15 }
 0x3b7   :  { %v478_v20 = vadd.f32 0.5, %v477_v16 }
 0x3b8   :  { %v375_v21 = vsel %vm2867_vm5, %v2673_v12, %v374_v18 }
 0x3b9   :  { %378 = vrot.lane.b32.xlu0 %v375_v21, %s2768_s3  ;;  %v479_v22 = vsel %vm2867_vm5, %v2675_v13, %v478_v20  ;;  %v376_v27 = vmul.f32 %v375_v21, %v2880_v32 }
 0x3ba   :  { %482 = vrot.lane.b32.xlu1 %v479_v22, %s2768_s3  ;;  %v480_v29 = vmul.f32 0.0, %v479_v22 }
 0x42b   :  { %v379_v23 = vpop.permute.xlu0 %378 }
 0x42c   :  { %v381_v24 = vmul.f32 %v379_v23, %v375_v21  ;;  %v483_v25 = vpop.permute.xlu1 %482 }
 0x42d   :  { %v485_v26 = vmul.f32 %v483_v25, %v479_v22 }
 0x42e   :  { %383 = vrot.lane.b32.xlu0 %v381_v24, %s2769_s19 }
 0x42f   :  { %487 = vrot.lane.b32.xlu1 %v485_v26, %s2769_s19 }
 0x4a0   :  { %v384_v28 = vpop.permute.xlu0 %383 }
 0x4a1   :  { %v386_v30 = vadd.f32 %v384_v28, %v376_v27  ;;  %v488_v31 = vpop.permute.xlu1 %487 }
 0x4a2   :  { %v2997_v33 = vadd.f32 %v488_v31, %v480_v29  ;;  %v162_v31 = vadd.f32 %v2951_v54, %v2864_v14 }
 0x4a3   :  { %2676 = vtanh.f32 %v386_v30 }
 0x4a4   :  { %2678 = vtanh.f32 %v2997_v33 }
 0x4ad   :  { %v2677_v34 = vpop.eup %2676 }
 0x4ae   :  { %v2679_v35 = vpop.eup %2678  ;;  %389 = vrot.lane.b32.xlu0 %v2677_v34, %s2768_s3 }
 0x4af   :  { %493 = vrot.lane.b32.xlu1 %v2679_v35, %s2768_s3 }
 0x520   :  { %v390_v36 = vpop.permute.xlu0 %389 }
 0x521   :  { %v392_v37 = vmul.f32 %v390_v36, %v375_v21  ;;  %v494_v38 = vpop.permute.xlu1 %493 }
 0x522   :  { %v3002_v40 = vmul.f32 %v494_v38, %v479_v22 }
 0x523   :  { %503 = vrot.lane.b32.xlu0 %v392_v37, %s2769_s19 }
 0x524   :  { %601 = vrot.lane.b32.xlu1 %v3002_v40, %s2768_s3 }
 0x595   :  { %v504_v32 = vpop.permute.xlu0 %503 }
 0x596   :  { %2300 = vmatmul.mubr.msk.f32.vlgmr.msra.gmra.mrb[10].mxu0 %vm198_vm6, %v504_v32  ;;  %v602_v41 = vpop.permute.xlu1 %601 }
 0x597   :  { %2542 = vmatpush3.bf16.msra.mxu0 %v2902_v39  ;;  %2318 = vmatprep.mubr.msk.f32.mxu0 %vm2765_vm2, %v2766_v8  ;;  %v604_v43 = vsel %vm198_vm6, %v504_v32, %v602_v41 }
 0x598   :  { %2543 = vmatprep.subr.bf16.mxu0 %v2764_v0 }
 0x59b   :  { %2545 = vmatpush3.bf16.msra.mxu0 %v2913_v42 }
 0x59c   :  { %2546 = vmatprep.subr.bf16.mxu0 %v2764_v0 }
 0x59f   :  { %2548 = vmatpush3.bf16.msra.mxu0 %v2931_v47 }
 0x5a0   :  { %2549 = vmatprep.subr.bf16.mxu0 %v2764_v0 }
 0x5a3   :  { %2551 = vmatpush3.bf16.msra.mxu0 %v2945_v51 }
 0x5a4   :  { %2570 = vmatprep.subr.bf16.mxu0 %v2764_v0 }
 0x5a6   :  { %2319 = vmatmul.mubr.msk.f32.vlgmr.msra.gmra.mrb[12].mxu0 %vm401_vm7, %v604_v43 }
 0x5a7   :  { %2572 = vmatpush3.bf16.msra.mxu0 %v2825_v4  ;;  %2359 = vmatprep.mubr.msk.f32.mxu0 %vm2765_vm2, %v2766_v8 }
 0x5a8   :  { %2573 = vmatprep.subr.bf16.mxu0 %v2764_v0 }
 0x5ab   :  { %2575 = vmatpush3.bf16.msra.mxu0 %v2846_v10 }
 0x5ac   :  { %2576 = vmatprep.subr.bf16.mxu0 %v2764_v0 }
 0x669   :  { %v573_v45 = vpop.f32.mrb[10].mxu0 }
 0x66a   :  { %v577_v46 = vadd.f32 %v573_v45, %v157_v44  ;;  %v2301_v48 = vpop.f32.mrb[11].mxu0 }
 0x66c   :  { %v578_v49 = vmul.f32 %v577_v46, %v2873_v19 }
 0x66e   :  { %2680 = vtanh.f32 %v578_v49 }
 0x678   :  { %v2681_v50 = vpop.eup %2680 }
 0x679   :  { %v674_v52 = vpop.f32.mrb[12].mxu0  ;;  %v580_v53 = vmul.f32 0.5, %v2681_v50 }
 0x67a   :  { %v675_v60 = vadd.f32 %v2983_v63, %v674_v52  ;;  %v2320_v61 = vpop.f32.mrb[13].mxu0 }
 0x67b   :  { %v581_v62 = vadd.f32 0.5, %v580_v53 }
 0x67c   :  { %v678_v1 = vmul.f32 %v675_v60, %v2873_v19 }
 0x67d   :  { %v582_v2 = vsel %vm2867_vm5, %v2681_v50, %v581_v62 }
 0x67e   :  { %2682 = vtanh.f32 %v678_v1  ;;  %585 = vrot.lane.b32.xlu0 %v582_v2, %s2768_s3  ;;  %v583_v13 = vmul.f32 %v582_v2, %v386_v30 }
 0x688   :  { %v2683_v55 = vpop.eup %2682 }
 0x689   :  { %v680_v3 = vmul.f32 0.5, %v2683_v55 }
 0x68b   :  { %v681_v5 = vadd.f32 0.5, %v680_v3 }
 0x68d   :  { %v682_v6 = vsel %vm2867_vm5, %v2683_v55, %v681_v5 }
 0x68e   :  { %685 = vrot.lane.b32.xlu1 %v682_v6, %s2768_s3  ;;  %v683_v20 = vmul.f32 %v682_v6, %v2997_v33 }
 0x6f0   :  { %v586_v7 = vpop.permute.xlu0 %585 }
 0x6f1   :  { %v588_v9 = vmul.f32 %v586_v7, %v582_v2 }
 0x6f3   :  { %590 = vrot.lane.b32.xlu0 %v588_v9, %s2769_s19 }
 0x700   :  { %v686_v11 = vpop.permute.xlu1 %685 }
 0x701   :  { %v688_v12 = vmul.f32 %v686_v11, %v682_v6 }
 0x703   :  { %690 = vrot.lane.b32.xlu1 %v688_v12, %s2769_s19 }
 0x765   :  { %v591_v15 = vpop.permute.xlu0 %590 }
 0x766   :  { %v593_v16 = vadd.f32 %v591_v15, %v583_v13 }
 0x768   :  { %2684 = vtanh.f32 %v593_v16 }
 0x772   :  { %v2685_v18 = vpop.eup %2684 }
 0x773   :  { %596 = vrot.lane.b32.xlu0 %v2685_v18, %s2768_s3 }
 0x775   :  { %v691_v21 = vpop.permute.xlu1 %690 }
 0x776   :  { %v693_v22 = vadd.f32 %v691_v21, %v683_v20  ;;  %v167_v20 = vadd.f32 %v2864_v14, %v2957_v57 }
 0x778   :  { %2686 = vtanh.f32 %v693_v22 }
 0x782   :  { %v2687_v23 = vpop.eup %2686 }
 0x783   :  { %696 = vrot.lane.b32.xlu1 %v2687_v23, %s2768_s3 }
 0x7e5   :  { %v597_v24 = vpop.permute.xlu0 %596 }
 0x7e6   :  { %v599_v25 = vmul.f32 %v597_v24, %v582_v2 }
 0x7e8   :  { %706 = vrot.lane.b32.xlu0 %v599_v25, %s2769_s19 }
 0x7f5   :  { %v697_v26 = vpop.permute.xlu1 %696 }
 0x7f6   :  { %v3043_v27 = vmul.f32 %v697_v26, %v682_v6 }
 0x7f8   :  { %804 = vrot.lane.b32.xlu1 %v3043_v27, %s2768_s3 }
 0x85a   :  { %v707_v28 = vpop.permute.xlu0 %706 }
 0x85b   :  { %2330 = vmatmul.mubr.msk.f32.vlgmr.msra.gmra.mrb[4].mxu1 %vm198_vm6, %v707_v28 }
 0x85c   :  { %2560 = vmatpush3.bf16.msra.mxu1 %v2902_v39  ;;  %2348 = vmatprep.mubr.msk.f32.mxu1 %vm2765_vm2, %v2766_v8 }
 0x85d   :  { %2561 = vmatprep.subr.bf16.mxu1 %v2764_v0 }
 0x860   :  { %2563 = vmatpush3.bf16.msra.mxu1 %v2913_v42 }
 0x861   :  { %2564 = vmatprep.subr.bf16.mxu1 %v2764_v0 }
 0x864   :  { %2566 = vmatpush3.bf16.msra.mxu1 %v2931_v47 }
 0x865   :  { %2567 = vmatprep.subr.bf16.mxu1 %v2764_v0 }
 0x868   :  { %2569 = vmatpush3.bf16.msra.mxu1 %v2945_v51 }
 0x869   :  { %2588 = vmatprep.subr.bf16.mxu1 %v2764_v0 }
 0x86a   :  { %v805_v29 = vpop.permute.xlu1 %804 }
 0x86b   :  { %v807_v30 = vsel %vm198_vm6, %v707_v28, %v805_v29 }
 0x86c   :  { %2349 = vmatmul.mubr.msk.f32.vlgmr.msra.gmra.mrb[6].mxu1 %vm401_vm7, %v807_v30 }
 0x86d   :  { %2590 = vmatpush3.bf16.msra.mxu1 %v2825_v4  ;;  %2389 = vmatprep.mubr.msk.f32.mxu1 %vm2765_vm2, %v2766_v8 }
 0x86e   :  { %2591 = vmatprep.subr.bf16.mxu1 %v2764_v0 }
 0x871   :  { %2593 = vmatpush3.bf16.msra.mxu1 %v2846_v10 }
 0x872   :  { %2594 = vmatprep.subr.bf16.mxu1 %v2764_v0 }
 0x92e   :  { %v776_v33 = vpop.f32.mrb[4].mxu1 }
 0x92f   :  { %v780_v34 = vadd.f32 %v776_v33, %v162_v31  ;;  %v2331_v35 = vpop.f32.mrb[5].mxu1 }
 0x931   :  { %v781_v36 = vmul.f32 %v780_v34, %v2873_v19 }
 0x933   :  { %2688 = vtanh.f32 %v781_v36 }
 0x93d   :  { %v2689_v37 = vpop.eup %2688 }
 0x93e   :  { %v783_v38 = vmul.f32 0.5, %v2689_v37 }
 0x93f   :  { %v877_v32 = vpop.f32.mrb[6].mxu1 }
 0x940   :  { %v878_v41 = vadd.f32 %v2983_v63, %v877_v32  ;;  %v2350_v43 = vpop.f32.mrb[7].mxu1  ;;  %v784_v44 = vadd.f32 0.5, %v783_v38 }
 0x942   :  { %v881_v45 = vmul.f32 %v878_v41, %v2873_v19  ;;  %v785_v46 = vsel %vm2867_vm5, %v2689_v37, %v784_v44 }
 0x943   :  { %788 = vrot.lane.b32.xlu0 %v785_v46, %s2768_s3  ;;  %v786_v62 = vmul.f32 %v785_v46, %v593_v16 }
 0x944   :  { %2690 = vtanh.f32 %v881_v45 }
 0x94e   :  { %v2691_v54 = vpop.eup %2690 }
 0x94f   :  { %v883_v48 = vmul.f32 0.5, %v2691_v54 }
 0x951   :  { %v884_v49 = vadd.f32 0.5, %v883_v48 }
 0x953   :  { %v885_v50 = vsel %vm2867_vm5, %v2691_v54, %v884_v49 }
 0x954   :  { %888 = vrot.lane.b32.xlu1 %v885_v50, %s2768_s3  ;;  %v886_v3 = vmul.f32 %v885_v50, %v693_v22 }
 0x9b5   :  { %v789_v52 = vpop.permute.xlu0 %788 }
 0x9b6   :  { %v791_v53 = vmul.f32 %v789_v52, %v785_v46 }
 0x9b8   :  { %793 = vrot.lane.b32.xlu0 %v791_v53, %s2769_s19 }
 0x9c6   :  { %v889_v60 = vpop.permute.xlu1 %888 }
 0x9c7   :  { %v891_v61 = vmul.f32 %v889_v60, %v885_v50 }
 0x9c9   :  { %893 = vrot.lane.b32.xlu1 %v891_v61, %s2769_s19 }
 0xa2a   :  { %v794_v1 = vpop.permute.xlu0 %793 }
 0xa2b   :  { %v796_v2 = vadd.f32 %v794_v1, %v786_v62 }
 0xa2d   :  { %2692 = vtanh.f32 %v796_v2 }
 0xa37   :  { %v2693_v55 = vpop.eup %2692 }
 0xa38   :  { %799 = vrot.lane.b32.xlu0 %v2693_v55, %s2768_s3 }
 0xa3b   :  { %v894_v5 = vpop.permute.xlu1 %893 }
 0xa3c   :  { %v896_v6 = vadd.f32 %v894_v5, %v886_v3  ;;  %v172_v3 = vadd.f32 %v2955_v56, %v2864_v14 }
 0xa3e   :  { %2694 = vtanh.f32 %v896_v6 }
 0xa48   :  { %v2695_v7 = vpop.eup %2694 }
 0xa49   :  { %899 = vrot.lane.b32.xlu1 %v2695_v7, %s2768_s3 }
 0xaaa   :  { %v800_v9 = vpop.permute.xlu0 %799 }
 0xaab   :  { %v802_v11 = vmul.f32 %v800_v9, %v785_v46 }
 0xaad   :  { %909 = vrot.lane.b32.xlu0 %v802_v11, %s2769_s19 }
 0xabb   :  { %v900_v12 = vpop.permute.xlu1 %899 }
 0xabc   :  { %v3082_v13 = vmul.f32 %v900_v12, %v885_v50 }
 0xabe   :  { %1007 = vrot.lane.b32.xlu1 %v3082_v13, %s2768_s3 }
 0xb1f   :  { %v910_v15 = vpop.permute.xlu0 %909 }
 0xb20   :  { %2360 = vmatmul.mubr.msk.f32.vlgmr.msra.gmra.mrb[14].mxu0 %vm198_vm6, %v910_v15 }
 0xb21   :  { %2578 = vmatpush3.bf16.msra.mxu0 %v2902_v39  ;;  %2378 = vmatprep.mubr.msk.f32.mxu0 %vm2765_vm2, %v2766_v8 }
 0xb22   :  { %2579 = vmatprep.subr.bf16.mxu0 %v2764_v0 }
 0xb25   :  { %2581 = vmatpush3.bf16.msra.mxu0 %v2913_v42 }
 0xb26   :  { %2582 = vmatprep.subr.bf16.mxu0 %v2764_v0 }
 0xb29   :  { %2584 = vmatpush3.bf16.msra.mxu0 %v2931_v47 }
 0xb2a   :  { %2585 = vmatprep.subr.bf16.mxu0 %v2764_v0 }
 0xb2d   :  { %2587 = vmatpush3.bf16.msra.mxu0 %v2945_v51 }
 0xb2e   :  { %2606 = vmatprep.subr.bf16.mxu0 %v2764_v0 }
 0xb30   :  { %v1008_v16 = vpop.permute.xlu1 %1007 }
 0xb31   :  { %v1010_v18 = vsel %vm198_vm6, %v910_v15, %v1008_v16 }
 0xb32   :  { %2379 = vmatmul.mubr.msk.f32.vlgmr.msra.gmra.mrb[16].mxu0 %vm401_vm7, %v1010_v18 }
 0xb33   :  { %2608 = vmatpush3.bf16.msra.mxu0 %v2825_v4  ;;  %2419 = vmatprep.mubr.msk.f32.mxu0 %vm2765_vm2, %v2766_v8 }
 0xb34   :  { %2609 = vmatprep.subr.bf16.mxu0 %v2764_v0 }
 0xb37   :  { %2611 = vmatpush3.bf16.msra.mxu0 %v2846_v10 }
 0xb38   :  { %2612 = vmatprep.subr.bf16.mxu0 %v2764_v0 }
 0xbf3   :  { %v979_v21 = vpop.f32.mrb[14].mxu0 }
 0xbf4   :  { %v983_v22 = vadd.f32 %v979_v21, %v167_v20  ;;  %v2361_v23 = vpop.f32.mrb[15].mxu0 }
 0xbf6   :  { %v984_v24 = vmul.f32 %v983_v22, %v2873_v19 }
 0xbf8   :  { %2696 = vtanh.f32 %v984_v24 }
 0xc02   :  { %v2697_v25 = vpop.eup %2696 }
 0xc03   :  { %v986_v26 = vmul.f32 0.5, %v2697_v25 }
 0xc05   :  { %v1080_v28 = vpop.f32.mrb[16].mxu0  ;;  %v987_v29 = vadd.f32 0.5, %v986_v26 }
 0xc06   :  { %v1081_v30 = vadd.f32 %v2983_v63, %v1080_v28  ;;  %v2380_v31 = vpop.f32.mrb[17].mxu0 }
 0xc07   :  { %v988_v33 = vsel %vm2867_vm5, %v2697_v25, %v987_v29 }
 0xc08   :  { %v1084_v34 = vmul.f32 %v1081_v30, %v2873_v19  ;;  %991 = vrot.lane.b32.xlu0 %v988_v33, %s2768_s3  ;;  %v989_v44 = vmul.f32 %v988_v33, %v796_v2 }
 0xc0a   :  { %2698 = vtanh.f32 %v1084_v34 }
 0xc14   :  { %v2699_v57 = vpop.eup %2698 }
 0xc15   :  { %v1086_v35 = vmul.f32 0.5, %v2699_v57 }
 0xc17   :  { %v1087_v36 = vadd.f32 0.5, %v1086_v35 }
 0xc19   :  { %v1088_v37 = vsel %vm2867_vm5, %v2699_v57, %v1087_v36 }
 0xc1a   :  { %1091 = vrot.lane.b32.xlu1 %v1088_v37, %s2768_s3  ;;  %v1089_v48 = vmul.f32 %v1088_v37, %v896_v6 }
 0xc7a   :  { %v992_v38 = vpop.permute.xlu0 %991 }
 0xc7b   :  { %v994_v32 = vmul.f32 %v992_v38, %v988_v33 }
 0xc7d   :  { %996 = vrot.lane.b32.xlu0 %v994_v32, %s2769_s19 }
 0xc8c   :  { %v1092_v41 = vpop.permute.xlu1 %1091 }
 0xc8d   :  { %v1094_v43 = vmul.f32 %v1092_v41, %v1088_v37 }
 0xc8f   :  { %1096 = vrot.lane.b32.xlu1 %v1094_v43, %s2769_s19 }
 0xcef   :  { %v997_v45 = vpop.permute.xlu0 %996 }
 0xcf0   :  { %v999_v46 = vadd.f32 %v997_v45, %v989_v44 }
 0xcf2   :  { %2700 = vtanh.f32 %v999_v46 }
 0xcfc   :  { %v2701_v54 = vpop.eup %2700 }
 0xcfd   :  { %1002 = vrot.lane.b32.xlu0 %v2701_v54, %s2768_s3 }
 0xd01   :  { %v1097_v49 = vpop.permute.xlu1 %1096 }
 0xd02   :  { %v1099_v50 = vadd.f32 %v1097_v49, %v1089_v48 }
 0xd04   :  { %2702 = vtanh.f32 %v1099_v50 }
 0xd0e   :  { %v2703_v52 = vpop.eup %2702 }
 0xd0f   :  { %1102 = vrot.lane.b32.xlu1 %v2703_v52, %s2768_s3 }
 0xd6f   :  { %v1003_v53 = vpop.permute.xlu0 %1002 }
 0xd70   :  { %v1005_v60 = vmul.f32 %v1003_v53, %v988_v33 }
 0xd72   :  { %1112 = vrot.lane.b32.xlu0 %v1005_v60, %s2769_s19 }
 0xd81   :  { %v1103_v61 = vpop.permute.xlu1 %1102 }
 0xd82   :  { %v3121_v62 = vmul.f32 %v1103_v61, %v1088_v37 }
 0xd84   :  { %1210 = vrot.lane.b32.xlu1 %v3121_v62, %s2768_s3 }
 0xde4   :  { %v1113_v1 = vpop.permute.xlu0 %1112 }
 0xde5   :  { %2390 = vmatmul.mubr.msk.f32.vlgmr.msra.gmra.mrb[8].mxu1 %vm198_vm6, %v1113_v1 }
 0xde6   :  { %2596 = vmatpush3.bf16.msra.mxu1 %v2902_v39  ;;  %2408 = vmatprep.mubr.msk.f32.mxu1 %vm2765_vm2, %v2766_v8 }
 0xde7   :  { %2597 = vmatprep.subr.bf16.mxu1 %v2764_v0 }
 0xdea   :  { %2599 = vmatpush3.bf16.msra.mxu1 %v2913_v42 }
 0xdeb   :  { %2600 = vmatprep.subr.bf16.mxu1 %v2764_v0 }
 0xdee   :  { %2602 = vmatpush3.bf16.msra.mxu1 %v2931_v47 }
 0xdef   :  { %2603 = vmatprep.subr.bf16.mxu1 %v2764_v0 }
 0xdf2   :  { %2605 = vmatpush3.bf16.msra.mxu1 %v2945_v51 }
 0xdf3   :  { %2624 = vmatprep.subr.bf16.mxu1 %v2764_v0 }
 0xdf6   :  { %v1211_v2 = vpop.permute.xlu1 %1210 }
 0xdf7   :  { %v1213_v55 = vsel %vm198_vm6, %v1113_v1, %v1211_v2 }
 0xdf8   :  { %2409 = vmatmul.mubr.msk.f32.vlgmr.msra.gmra.mrb[10].mxu1 %vm401_vm7, %v1213_v55 }
 0xdf9   :  { %2626 = vmatpush3.bf16.msra.mxu1 %v2825_v4  ;;  %2449 = vmatprep.mubr.msk.f32.mxu1 %vm2765_vm2, %v2766_v8 }
 0xdfa   :  { %2627 = vmatprep.subr.bf16.mxu1 %v2764_v0 }
 0xdfd   :  { %2629 = vmatpush3.bf16.msra.mxu1 %v2846_v10 }
 0xdfe   :  { %2630 = vmatprep.subr.bf16.mxu1 %v2764_v0 }
 0xeb8   :  { %v1182_v5 = vpop.f32.mrb[8].mxu1 }
 0xeb9   :  { %v1186_v6 = vadd.f32 %v1182_v5, %v172_v3  ;;  %v2391_v7 = vpop.f32.mrb[9].mxu1 }
 0xebb   :  { %v1187_v9 = vmul.f32 %v1186_v6, %v2873_v19 }
 0xebd   :  { %2704 = vtanh.f32 %v1187_v9 }
 0xec7   :  { %v2705_v11 = vpop.eup %2704 }
 0xec8   :  { %v1189_v4 = vmul.f32 0.5, %v2705_v11 }
 0xeca   :  { %v1190_v12 = vadd.f32 0.5, %v1189_v4 }
 0xecb   :  { %v1283_v15 = vpop.f32.mrb[10].mxu1 }
 0xecc   :  { %v1284_v16 = vadd.f32 %v2983_v63, %v1283_v15  ;;  %v2410_v18 = vpop.f32.mrb[11].mxu1  ;;  %v1191_v10 = vsel %vm2867_vm5, %v2705_v11, %v1190_v12 }
 0xecd   :  { %1194 = vrot.lane.b32.xlu0 %v1191_v10, %s2768_s3  ;;  %v1192_v29 = vmul.f32 %v1191_v10, %v999_v46  ;;  %v177_v46 = vadd.f32 %v2864_v14, %v2961_v59 }
 0xece   :  { %v1287_v56 = vmul.f32 %v1284_v16, %v2873_v19 }
 0xed0   :  { %2706 = vtanh.f32 %v1287_v56 }
 0xeda   :  { %v2707_v20 = vpop.eup %2706 }
 0xedb   :  { %v1289_v21 = vmul.f32 0.5, %v2707_v20 }
 0xedd   :  { %v1290_v22 = vadd.f32 0.5, %v1289_v21 }
 0xedf   :  { %v1291_v23 = vsel %vm2867_vm5, %v2707_v20, %v1290_v22 }
 0xee0   :  { %1294 = vrot.lane.b32.xlu1 %v1291_v23, %s2768_s3  ;;  %v1292_v34 = vmul.f32 %v1291_v23, %v1099_v50 }
 0xf3f   :  { %v1195_v24 = vpop.permute.xlu0 %1194 }
 0xf40   :  { %v1197_v25 = vmul.f32 %v1195_v24, %v1191_v10 }
 0xf42   :  { %1199 = vrot.lane.b32.xlu0 %v1197_v25, %s2769_s19 }
 0xf52   :  { %v1295_v26 = vpop.permute.xlu1 %1294 }
 0xf53   :  { %v1297_v28 = vmul.f32 %v1295_v26, %v1291_v23 }
 0xf55   :  { %1299 = vrot.lane.b32.xlu1 %v1297_v28, %s2769_s19 }
 0xfb4   :  { %v1200_v30 = vpop.permute.xlu0 %1199 }
 0xfb5   :  { %v3157_v31 = vadd.f32 %v1200_v30, %v1192_v29 }
 0xfb7   :  { %2708 = vtanh.f32 %v3157_v31 }
 0xfc1   :  { %v2709_v33 = vpop.eup %2708 }
 0xfc2   :  { %1205 = vrot.lane.b32.xlu0 %v2709_v33, %s2768_s3 }
 0xfc7   :  { %v1300_v57 = vpop.permute.xlu1 %1299 }
 0xfc8   :  { %v3161_v35 = vadd.f32 %v1300_v57, %v1292_v34 }
 0xfca   :  { %2710 = vtanh.f32 %v3161_v35 }
 0xfd4   :  { %v2711_v36 = vpop.eup %2710 }
 0xfd5   :  { %1305 = vrot.lane.b32.xlu1 %v2711_v36, %s2768_s3 }
0x1034   :  { %v1206_v37 = vpop.permute.xlu0 %1205 }
0x1035   :  { %v1208_v38 = vmul.f32 %v1206_v37, %v1191_v10 }
0x1037   :  { %1315 = vrot.lane.b32.xlu0 %v1208_v38, %s2769_s19 }
0x1047   :  { %v1306_v32 = vpop.permute.xlu1 %1305 }
0x1048   :  { %v3166_v41 = vmul.f32 %v1306_v32, %v1291_v23 }
0x104a   :  { %1413 = vrot.lane.b32.xlu1 %v3166_v41, %s2768_s3 }
0x10a9   :  { %v1316_v43 = vpop.permute.xlu0 %1315 }
0x10aa   :  { %2420 = vmatmul.mubr.msk.f32.vlgmr.msra.gmra.mrb[18].mxu0 %vm198_vm6, %v1316_v43 }
0x10ab   :  { %2614 = vmatpush3.bf16.msra.mxu0 %v2902_v39  ;;  %2438 = vmatprep.mubr.msk.f32.mxu0 %vm2765_vm2, %v2766_v8 }
0x10ac   :  { %2615 = vmatprep.subr.bf16.mxu0 %v2764_v0 }
0x10af   :  { %2617 = vmatpush3.bf16.msra.mxu0 %v2913_v42 }
0x10b0   :  { %2618 = vmatprep.subr.bf16.mxu0 %v2764_v0 }
0x10b3   :  { %2620 = vmatpush3.bf16.msra.mxu0 %v2931_v47 }
0x10b4   :  { %2621 = vmatprep.subr.bf16.mxu0 %v2764_v0 }
0x10b7   :  { %2623 = vmatpush3.bf16.msra.mxu0 %v2945_v51 }
0x10b8   :  { %2642 = vmatprep.subr.bf16.mxu0 %v2764_v0 }
0x10bc   :  { %v1414_v44 = vpop.permute.xlu1 %1413 }
0x10bd   :  { %v1416_v45 = vsel %vm198_vm6, %v1316_v43, %v1414_v44 }
0x10be   :  { %2439 = vmatmul.mubr.msk.f32.vlgmr.msra.gmra.mrb[20].mxu0 %vm401_vm7, %v1416_v45 }
0x10bf   :  { %2644 = vmatpush3.bf16.msra.mxu0 %v2902_v39  ;;  %2487 = vmatprep.mubr.msk.f32.mxu0 %vm2765_vm2, %v2766_v8 }
0x10c0   :  { %2645 = vmatprep.subr.bf16.mxu0 %v2764_v0 }
0x10c3   :  { %2647 = vmatpush3.bf16.msra.mxu0 %v2913_v42 }
0x10c4   :  { %2648 = vmatprep.subr.bf16.mxu0 %v2764_v0 }
0x10c7   :  { %2650 = vmatpush3.bf16.msra.mxu0 %v2931_v47 }
0x10c8   :  { %2651 = vmatprep.subr.bf16.mxu0 %v2764_v0 }
0x10cb   :  { %2653 = vmatpush3.bf16.msra.mxu0 %v2945_v51 }
0x117d   :  { %v1385_v54 = vpop.f32.mrb[18].mxu0 }
0x117e   :  { %v1389_v48 = vadd.f32 %v1385_v54, %v177_v46  ;;  %v2421_v49 = vpop.f32.mrb[19].mxu0 }
0x1180   :  { %v1390_v50 = vmul.f32 %v1389_v48, %v2873_v19 }
0x1182   :  { %2712 = vtanh.f32 %v1390_v50 }
0x118c   :  { %v2713_v52 = vpop.eup %2712 }
0x118d   :  { %v1392_v53 = vmul.f32 0.5, %v2713_v52 }
0x118f   :  { %v1393_v60 = vadd.f32 0.5, %v1392_v53 }
0x1191   :  { %v1486_v61 = vpop.f32.mrb[20].mxu0  ;;  %v1394_v1 = vsel %vm2867_vm5, %v2713_v52, %v1393_v60 }
0x1192   :  { %v1487_v2 = vadd.f32 %v2983_v63, %v1486_v61  ;;  %v2440_v55 = vpop.f32.mrb[21].mxu0  ;;  %1397 = vrot.lane.b32.xlu0 %v1394_v1, %s2768_s3  ;;  %v1395_v15 = vmul.f32 %v1394_v1, %v3157_v31 }
0x1194   :  { %v1490_v59 = vmul.f32 %v1487_v2, %v2873_v19 }
0x1196   :  { %2714 = vtanh.f32 %v1490_v59 }
0x11a0   :  { %v2715_v3 = vpop.eup %2714 }
0x11a1   :  { %v1492_v5 = vmul.f32 0.5, %v2715_v3 }
0x11a3   :  { %v1493_v6 = vadd.f32 0.5, %v1492_v5 }
0x11a5   :  { %v1494_v7 = vsel %vm2867_vm5, %v2715_v3, %v1493_v6 }
0x11a6   :  { %1497 = vrot.lane.b32.xlu1 %v1494_v7, %s2768_s3  ;;  %v1495_v56 = vmul.f32 %v1494_v7, %v3161_v35 }
0x1204   :  { %v1398_v9 = vpop.permute.xlu0 %1397 }
0x1205   :  { %v1400_v11 = vmul.f32 %v1398_v9, %v1394_v1 }
0x1207   :  { %1402 = vrot.lane.b32.xlu0 %v1400_v11, %s2769_s19 }
0x1218   :  { %v1498_v4 = vpop.permute.xlu1 %1497 }
0x1219   :  { %v1500_v12 = vmul.f32 %v1498_v4, %v1494_v7 }
0x121b   :  { %1502 = vrot.lane.b32.xlu1 %v1500_v12, %s2769_s19 }
0x1279   :  { %v1403_v16 = vpop.permute.xlu0 %1402 }
0x127a   :  { %v1405_v18 = vadd.f32 %v1403_v16, %v1395_v15 }
0x127c   :  { %2716 = vtanh.f32 %v1405_v18 }
0x1286   :  { %v2717_v10 = vpop.eup %2716 }
0x1287   :  { %1408 = vrot.lane.b32.xlu0 %v2717_v10, %s2768_s3 }
0x128d   :  { %v1503_v20 = vpop.permute.xlu1 %1502 }
0x128e   :  { %v1505_v21 = vadd.f32 %v1503_v20, %v1495_v56 }
0x1290   :  { %2718 = vtanh.f32 %v1505_v21 }
0x129a   :  { %v2719_v22 = vpop.eup %2718 }
0x129b   :  { %1508 = vrot.lane.b32.xlu1 %v2719_v22, %s2768_s3  ;;  %v1846_v22 = vld [vmem:[%s3327_s6 + $0x10] sm:$0xff] }
0x12f9   :  { %v1409_v23 = vpop.permute.xlu0 %1408 }
0x12fa   :  { %v1411_v24 = vmul.f32 %v1409_v23, %v1394_v1  ;;  %v1847_v23 = vld [vmem:[%s3327_s6 + $0x18] sm:$0xff] }
0x12fc   :  { %1518 = vrot.lane.b32.xlu0 %v1411_v24, %s2769_s19  ;;  %v2658_v24 = vpack.c.bf16 %v1847_v23, %v1846_v22 }
0x130d   :  { %v1509_v25 = vpop.permute.xlu1 %1508 }
0x130e   :  { %v3210_v26 = vmul.f32 %v1509_v25, %v1494_v7 }
0x1310   :  { %1616 = vrot.lane.b32.xlu1 %v3210_v26, %s2768_s3 }
0x136e   :  { %v1519_v28 = vpop.permute.xlu0 %1518 }
0x136f   :  { %2450 = vmatmul.mubr.msk.f32.vlgmr.msra.gmra.mrb[12].mxu1 %vm198_vm6, %v1519_v28 }
0x1370   :  { %2632 = vmatpush3.bf16.msra.mxu1 %v2902_v39  ;;  %2468 = vmatprep.mubr.msk.f32.mxu1 %vm2765_vm2, %v2766_v8  ;;  %v182_v8 = vadd.f32 %v2959_v58, %v2864_v14 }
0x1371   :  { %2633 = vmatprep.subr.bf16.mxu1 %v2764_v0 }
0x1374   :  { %2635 = vmatpush3.bf16.msra.mxu1 %v2913_v42 }
0x1375   :  { %2636 = vmatprep.subr.bf16.mxu1 %v2764_v0 }
0x1378   :  { %2638 = vmatpush3.bf16.msra.mxu1 %v2931_v47 }
0x1379   :  { %2639 = vmatprep.subr.bf16.mxu1 %v2764_v0 }
0x137c   :  { %2641 = vmatpush3.bf16.msra.mxu1 %v2945_v51 }
0x1382   :  { %v1617_v29 = vpop.permute.xlu1 %1616 }
0x1383   :  { %v1619_v30 = vsel %vm198_vm6, %v1519_v28, %v1617_v29 }
0x1384   :  { %2469 = vmatmul.mubr.msk.f32.vlgmr.msra.gmra.mrb[14].mxu1 %vm401_vm7, %v1619_v30 }
0x1442   :  { %v1588_v39 = vpop.f32.mrb[12].mxu1 }
0x1443   :  { %v1592_v31 = vadd.f32 %v1588_v39, %v182_v8  ;;  %v2451_v33 = vpop.f32.mrb[13].mxu1 }
0x1445   :  { %v1593_v42 = vmul.f32 %v1592_v31, %v2873_v19 }
0x1447   :  { %2720 = vtanh.f32 %v1593_v42 }
0x1451   :  { %v2721_v34 = vpop.eup %2720 }
0x1452   :  { %v1595_v47 = vmul.f32 0.5, %v2721_v34 }
0x1454   :  { %v1596_v57 = vadd.f32 0.5, %v1595_v47 }
0x1456   :  { %v1597_v0 = vsel %vm2867_vm5, %v2721_v34, %v1596_v57 }
0x1457   :  { %v1689_v51 = vpop.f32.mrb[14].mxu1  ;;  %1600 = vrot.lane.b32.xlu0 %v1597_v0, %s2768_s3  ;;  %v1598_v54 = vmul.f32 %v1597_v0, %v1405_v18 }
0x1458   :  { %v1690_v35 = vadd.f32 %v2983_v63, %v1689_v51  ;;  %v2470_v36 = vpop.f32.mrb[15].mxu1 }
0x145a   :  { %v1693_v14 = vmul.f32 %v1690_v35, %v2873_v19 }
0x145c   :  { %2722 = vtanh.f32 %v1693_v14 }
0x1466   :  { %v2723_v58 = vpop.eup %2722 }
0x1467   :  { %v1695_v37 = vmul.f32 0.5, %v2723_v58 }
0x1469   :  { %v1696_v38 = vadd.f32 0.5, %v1695_v37 }
0x146b   :  { %v1697_v32 = vsel %vm2867_vm5, %v2723_v58, %v1696_v38 }
0x146c   :  { %1700 = vrot.lane.b32.xlu1 %v1697_v32, %s2768_s3  ;;  %v1698_v52 = vmul.f32 %v1697_v32, %v1505_v21  ;;  %v1844_v21 = vld [vmem:[%s3327_s6] sm:$0xff] }
0x14c9   :  { %v1601_v43 = vpop.permute.xlu0 %1600 }
0x14ca   :  { %v1603_v44 = vmul.f32 %v1601_v43, %v1597_v0 }
0x14cc   :  { %1605 = vrot.lane.b32.xlu0 %v1603_v44, %s2769_s19  ;;  %v2094_v44 = vld [vmem:[%s3328_s7] ss:$0 sm:$0xff] }
0x14de   :  { %v1701_v45 = vpop.permute.xlu1 %1700 }
0x14df   :  { %v1703_v46 = vmul.f32 %v1701_v45, %v1697_v32 }
0x14e1   :  { %1705 = vrot.lane.b32.xlu1 %v1703_v46, %s2769_s19 }
0x153e   :  { %v1606_v48 = vpop.permute.xlu0 %1605 }
0x153f   :  { %v1608_v49 = vadd.f32 %v1606_v48, %v1598_v54 }
0x1541   :  { %2724 = vtanh.f32 %v1608_v49 }
0x154b   :  { %v2725_v50 = vpop.eup %2724 }
0x154c   :  { %1611 = vrot.lane.b32.xlu0 %v2725_v50, %s2768_s3 }
0x1553   :  { %v1706_v53 = vpop.permute.xlu1 %1705 }
0x1554   :  { %v1708_v60 = vadd.f32 %v1706_v53, %v1698_v52 }
0x1556   :  { %2726 = vtanh.f32 %v1708_v60 }
0x1560   :  { %v2727_v61 = vpop.eup %2726 }
0x1561   :  { %1711 = vrot.lane.b32.xlu1 %v2727_v61, %s2768_s3 }
0x15be   :  { %v1612_v1 = vpop.permute.xlu0 %1611 }
0x15bf   :  { %v1614_v2 = vmul.f32 %v1612_v1, %v1597_v0 }
0x15c1   :  { %1721 = vrot.lane.b32.xlu0 %v1614_v2, %s2769_s19 }
0x15d3   :  { %v1712_v55 = vpop.permute.xlu1 %1711 }
0x15d4   :  { %v1714_v59 = vmul.f32 %v1712_v55, %v1697_v32 }
0x15d6   :  { %1724 = vrot.lane.b32.xlu1 %v1714_v59, %s2768_s3 }
0x1633   :  { %v1722_v3 = vpop.permute.xlu0 %1721 }
0x1648   :  { %v1725_v5 = vpop.permute.xlu1 %1724 }
0x1649   :  { %v1727_v6 = vsel %vm198_vm6, %v1722_v3, %v1725_v5 }
0x164a   :  { %2488 = vmatmul.mubr.msk.f32.vlgmr.msra.gmra.mrb[22].mxu0 %vm401_vm7, %v1727_v6 }
0x171d   :  { %v1797_v7 = vpop.f32.mrb[22].mxu0 }
0x171e   :  { %v1798_v9 = vadd.f32 %v2983_v63, %v1797_v7  ;;  %v2489_v11 = vpop.f32.mrb[23].mxu0 }
0x1720   :  { %v1801_v4 = vmul.f32 %v1798_v9, %v2873_v19 }
0x1722   :  { %2728 = vtanh.f32 %v1801_v4 }
0x172c   :  { %v2729_v12 = vpop.eup %2728 }
0x172d   :  { %v1803_v15 = vmul.f32 0.5, %v2729_v12 }
0x172f   :  { %v1804_v16 = vadd.f32 0.5, %v1803_v15 }
0x1731   :  { %v1805_v18 = vsel %vm2867_vm5, %v2729_v12, %v1804_v16 }
0x1732   :  { %1808 = vrot.lane.b32.xlu0 %v1805_v18, %s2768_s3  ;;  %v1806_v19 = vmul.f32 %v1805_v18, %v1708_v60 }
0x17a4   :  { %v1809_v10 = vpop.permute.xlu0 %1808 }
0x17a5   :  { %v1811_v56 = vmul.f32 %v1809_v10, %v1805_v18 }
0x17a7   :  { %1813 = vrot.lane.b32.xlu1 %v1811_v56, %s2769_s19 }
0x17ab   :  { %498 = vrot.lane.b32.xlu1 %v3002_v40, %s2769_s19  ;;  %v1845_v40 = vld [vmem:[%s3327_s6 + $0x8] sm:$0xff] }
0x17af   :  { %904 = vrot.lane.b32.xlu1 %v3082_v13, %s2769_s19  ;;  %v2654_v13 = vpack.c.bf16 %v1845_v40, %v1844_v21 }
0x17b1   :  { %2655 = vmatprep.subr.bf16.mxu1 %v2654_v13 }
0x17b2   :  { %2657 = vmatpush3.bf16.msra.mxu1 %v2654_v13 }
0x17b3   :  { %1310 = vrot.lane.b32.xlu1 %v3166_v41, %s2769_s19  ;;  %2659 = vmatprep.subr.bf16.mxu1 %v2658_v24 }
0x17b6   :  { %2661 = vmatpush3.bf16.msra.mxu1 %v2658_v24 }
0x17b7   :  { %1716 = vrot.lane.b32.xlu1 %v1714_v59, %s2769_s19 }
0x1819   :  { %v1814_v17 = vpop.permute.xlu1 %1813 }
0x181a   :  { %v1816_v63 = vadd.f32 %v1814_v17, %v1806_v19 }
0x181c   :  { %2730 = vtanh.f32 %v1816_v63 }
0x181d   :  { %v499_v20 = vpop.permute.xlu1 %498 }
0x181e   :  { %501 = vst.msk [vmem:[#allocation2] sm:$0xff] %vm198_vm6, %v499_v20 }
0x1821   :  { %v905_v41 = vpop.permute.xlu1 %904 }
0x1822   :  { %907 = vst.msk [vmem:[#allocation2 + $0x10] sm:$0xff] %vm198_vm6, %v905_v41 }
0x1825   :  { %v1311_v25 = vpop.permute.xlu1 %1310  ;;  %v1828_v28 = vld [vmem:[#allocation2] sm:$0xff] }
0x1826   :  { %v2731_v29 = vpop.eup %2730  ;;  %1313 = vst.msk [vmem:[#allocation2 + $0x20] sm:$0xff] %vm198_vm6, %v1311_v25  ;;  %v1836_v30 = vmax.f32 %v1828_v28, 0.0 }
0x1827   :  { %1819 = vrot.lane.b32.xlu0 %v2731_v29, %s2768_s3 }
0x1828   :  { %2498 = vmatprep.mubr.msk.f32.mxu1 %vm198_vm6, %v1836_v30 }
0x1829   :  { %v1717_v8 = vpop.permute.xlu1 %1716  ;;  %v1830_v34 = vld [vmem:[#allocation2 + $0x10] sm:$0xff] }
0x182a   :  { %1719 = vst.msk [vmem:[#allocation2 + $0x30] sm:$0xff] %vm198_vm6, %v1717_v8 }
0x182b   :  { %701 = vrot.lane.b32.xlu0 %v3043_v27, %s2769_s19 }
0x182f   :  { %1107 = vrot.lane.b32.xlu0 %v3121_v62, %s2769_s19  ;;  %v1838_v62 = vmax.f32 %v1830_v34, 0.0 }
0x1831   :  { %v1834_v36 = vld [vmem:[#allocation2 + $0x30] sm:$0xff] }
0x1832   :  { %v1842_v37 = vmax.f32 %v1834_v36, 0.0 }
0x1833   :  { %1513 = vrot.lane.b32.xlu0 %v3210_v26, %s2769_s19  ;;  %v1832_v26 = vld [vmem:[#allocation2 + $0x20] sm:$0xff] }
0x1834   :  { %v1840_v35 = vmax.f32 %v1832_v26, 0.0 }
0x1899   :  { %v1820_v39 = vpop.permute.xlu0 %1819 }
0x189a   :  { %v1822_v31 = vmul.f32 %v1820_v39, %v1805_v18 }
0x189c   :  { %1824 = vrot.lane.b32.xlu0 %v1822_v31, %s2769_s19 }
0x189d   :  { %v702_v33 = vpop.permute.xlu0 %701 }
0x189e   :  { %704 = vst.msk [vmem:[#allocation2 + $0x8] sm:$0xff] %vm198_vm6, %v702_v33 }
0x18a1   :  { %v1108_v42 = vpop.permute.xlu0 %1107 }
0x18a2   :  { %1110 = vst.msk [vmem:[#allocation2 + $0x18] sm:$0xff] %vm198_vm6, %v1108_v42 }
0x18a5   :  { %v1514_v47 = vpop.permute.xlu0 %1513  ;;  %v1829_v57 = vld [vmem:[#allocation2 + $0x8] sm:$0xff] }
0x18a6   :  { %1516 = vst.msk [vmem:[#allocation2 + $0x28] sm:$0xff] %vm198_vm6, %v1514_v47  ;;  %v1837_v27 = vmax.f32 %v1829_v57, 0.0 }
0x18a8   :  { %2499 = vmatmul.mubr.msk.f32.vlgmr.msra.gmra.mrb[16].mxu1 %vm198_vm6, %v1837_v27 }
0x18a9   :  { %2501 = vmatprep.mubr.msk.f32.mxu1 %vm198_vm6, %v1838_v62  ;;  %v1831_v0 = vld [vmem:[#allocation2 + $0x18] sm:$0xff] }
0x18aa   :  { %v1839_v51 = vmax.f32 %v1831_v0, 0.0 }
0x18ac   :  { %2502 = vmatmul.mubr.msk.f32.gmra.mrb[18].mxu1 %vm198_vm6, %v1839_v51 }
0x18ad   :  { %2504 = vmatprep.mubr.msk.f32.mxu1 %vm198_vm6, %v1840_v35  ;;  %v1833_v14 = vld [vmem:[#allocation2 + $0x28] sm:$0xff] }
0x18ae   :  { %v1841_v58 = vmax.f32 %v1833_v14, 0.0 }
0x18b0   :  { %2505 = vmatmul.mubr.msk.f32.gmra.mrb[20].mxu1 %vm198_vm6, %v1841_v58 }
0x18b1   :  { %2507 = vmatprep.mubr.msk.f32.mxu1 %vm198_vm6, %v1842_v37 }
0x190e   :  { %v1825_v38 = vpop.permute.xlu0 %1824 }
0x190f   :  { %1827 = vst.msk [vmem:[#allocation2 + $0x38] sm:$0xff] %vm198_vm6, %v1825_v38 }
0x1916   :  { %v1835_v32 = vld [vmem:[#allocation2 + $0x38] sm:$0xff] }
0x1917   :  { %v1843_v43 = vmax.f32 %v1835_v32, 0.0 }
0x1919   :  { %2508 = vmatmul.mubr.msk.f32.gmra.mrb[22].mxu1 %vm198_vm6, %v1843_v43 }
0x197b   :  { %v2500_v45 = vpop.f32.mrb[16].mxu1 }
0x197c   :  { %v1951_v46 = vadd.f32 %v2500_v45, %v2094_v44  ;;  %v1945_v54 = vpop.f32.mrb[17].mxu1 }
0x197d   :  { %v1946_v48 = vadd.f32 %v2094_v44, %v1945_v54 }
0x197e   :  { %1986 = vmax.xlane.f32.xlu0 %v1951_v46 }
0x197f   :  { %1984 = vmax.xlane.f32.xlu1 %v1946_v48  ;;  %v2503_v49 = vpop.f32.mrb[18].mxu1 }
0x1980   :  { %v1961_v50 = vadd.f32 %v2503_v49, %v2094_v44  ;;  %v1955_v52 = vpop.f32.mrb[19].mxu1 }
0x1981   :  { %v1956_v53 = vadd.f32 %v2094_v44, %v1955_v52 }
0x1983   :  { %1990 = vmax.xlane.f32.xlu1 %v1961_v50  ;;  %1988 = vmax.xlane.f32.xlu0 %v1956_v53  ;;  %v2506_v60 = vpop.f32.mrb[20].mxu1 }
0x1984   :  { %v1971_v61 = vadd.f32 %v2506_v60, %v2094_v44  ;;  %v1965_v1 = vpop.f32.mrb[21].mxu1 }
0x1985   :  { %v1966_v2 = vadd.f32 %v2094_v44, %v1965_v1 }
0x1987   :  { %1994 = vmax.xlane.f32.xlu1 %v1971_v61  ;;  %1992 = vmax.xlane.f32.xlu0 %v1966_v2 }
0x19ec   :  { %v2509_v55 = vpop.f32.mrb[22].mxu1 }
0x19ed   :  { %v1981_v59 = vadd.f32 %v2509_v55, %v2094_v44  ;;  %v1975_v3 = vpop.f32.mrb[23].mxu1 }
0x19ee   :  { %v1976_v5 = vadd.f32 %v2094_v44, %v1975_v3 }
0x19ef   :  { %1998 = vmax.xlane.f32.xlu1 %v1981_v59 }
0x19f0   :  { %1996 = vmax.xlane.f32.xlu0 %v1976_v5 }
0x1a0b   :  { %v1987_v6 = vpop.xlane.xlu0 %1986 }
0x1a0c   :  { %v2001_v7 = vsub.f32 %v1951_v46, %v1987_v6  ;;  %v1985_v9 = vpop.xlane.xlu1 %1984 }
0x1a0d   :  { %v2000_v11 = vsub.f32 %v1946_v48, %v1985_v9 }
0x1a0e   :  { %v2010_v4 = vmul.f32 1.442695, %v2001_v7 }
0x1a0f   :  { %v2008_v12 = vmul.f32 1.442695, %v2000_v11 }
0x1a10   :  { %2732 = vpow2.f32 %v2010_v4  ;;  %v1991_v15 = vpop.xlane.xlu1 %1990  ;;  %v1989_v16 = vpop.xlane.xlu0 %1988 }
0x1a11   :  { %2734 = vpow2.f32 %v2008_v12  ;;  %v2003_v18 = vsub.f32 %v1961_v50, %v1991_v15  ;;  %v2002_v10 = vsub.f32 %v1956_v53, %v1989_v16 }
0x1a13   :  { %v2014_v56 = vmul.f32 1.442695, %v2003_v18  ;;  %v2012_v19 = vmul.f32 1.442695, %v2002_v10 }
0x1a14   :  { %v1995_v17 = vpop.xlane.xlu1 %1994  ;;  %v1993_v63 = vpop.xlane.xlu0 %1992 }
0x1a15   :  { %2736 = vpow2.f32 %v2014_v56  ;;  %v2005_v20 = vsub.f32 %v1971_v61, %v1995_v17  ;;  %v2004_v21 = vsub.f32 %v1966_v2, %v1993_v63 }
0x1a16   :  { %2738 = vpow2.f32 %v2012_v19 }
0x1a17   :  { %v2018_v40 = vmul.f32 1.442695, %v2005_v20  ;;  %v2016_v13 = vmul.f32 1.442695, %v2004_v21 }
0x1a19   :  { %2740 = vpow2.f32 %v2018_v40 }
0x1a1a   :  { %v2733_v41 = vpop.eup %2732  ;;  %2742 = vpow2.f32 %v2016_v13 }
0x1a1b   :  { %v2735_v22 = vpop.eup %2734  ;;  %2026 = vadd.xlane.f32.xlu1 %v2733_v41 }
0x1a1c   :  { %2024 = vadd.xlane.f32.xlu0 %v2735_v22 }
0x1a1f   :  { %v2737_v23 = vpop.eup %2736 }
0x1a20   :  { %v2739_v24 = vpop.eup %2738  ;;  %2030 = vadd.xlane.f32.xlu1 %v2737_v23 }
0x1a21   :  { %2028 = vadd.xlane.f32.xlu0 %v2739_v24 }
0x1a23   :  { %v2741_v25 = vpop.eup %2740 }
0x1a24   :  { %v2743_v28 = vpop.eup %2742  ;;  %2034 = vadd.xlane.f32.xlu1 %v2741_v25 }
0x1a25   :  { %2032 = vadd.xlane.f32.xlu0 %v2743_v28 }
0x1a7c   :  { %v1999_v29 = vpop.xlane.xlu1 %1998 }
0x1a7d   :  { %v2007_v30 = vsub.f32 %v1981_v59, %v1999_v29  ;;  %v1997_v8 = vpop.xlane.xlu0 %1996 }
0x1a7e   :  { %v2006_v39 = vsub.f32 %v1976_v5, %v1997_v8 }
0x1a7f   :  { %v2022_v31 = vmul.f32 1.442695, %v2007_v30 }
0x1a80   :  { %v2020_v33 = vmul.f32 1.442695, %v2006_v39 }
0x1a81   :  { %2744 = vpow2.f32 %v2022_v31 }
0x1a82   :  { %2746 = vpow2.f32 %v2020_v33 }
0x1a8b   :  { %v2745_v42 = vpop.eup %2744 }
0x1a8c   :  { %v2747_v34 = vpop.eup %2746  ;;  %2038 = vadd.xlane.f32.xlu1 %v2745_v42 }
0x1a8d   :  { %2036 = vadd.xlane.f32.xlu0 %v2747_v34 }
0x1aa8   :  { %v2027_v47 = vpop.xlane.xlu1 %2026 }
0x1aa9   :  { %2748 = vrcp.f32 %v2027_v47  ;;  %v2025_v57 = vpop.xlane.xlu0 %2024 }
0x1aaa   :  { %2750 = vrcp.f32 %v2025_v57 }
0x1aad   :  { %v2031_v27 = vpop.xlane.xlu1 %2030 }
0x1aae   :  { %2752 = vrcp.f32 %v2031_v27  ;;  %v2029_v62 = vpop.xlane.xlu0 %2028 }
0x1aaf   :  { %2754 = vrcp.f32 %v2029_v62 }
0x1ab1   :  { %v2035_v26 = vpop.xlane.xlu1 %2034 }
0x1ab2   :  { %2756 = vrcp.f32 %v2035_v26  ;;  %v2033_v0 = vpop.xlane.xlu0 %2032 }
0x1ab3   :  { %v2749_v51 = vpop.eup %2748  ;;  %2758 = vrcp.f32 %v2033_v0 }
0x1ab4   :  { %v2751_v35 = vpop.eup %2750  ;;  %v2049_v36 = vmul.f32 %v2749_v51, %v2733_v41 }
0x1ab5   :  { %v2048_v14 = vmul.f32 %v2751_v35, %v2735_v22 }
0x1ab6   :  { %2057 = vst [vmem:[%s3329_s8 + $0x8] sm:$0xff] %v2049_v36 }
0x1ab7   :  { %2056 = vst [vmem:[%s3329_s8] sm:$0xff] %v2048_v14 }
0x1ab8   :  { %v2753_v58 = vpop.eup %2752 }
0x1ab9   :  { %v2755_v37 = vpop.eup %2754  ;;  %v2051_v38 = vmul.f32 %v2753_v58, %v2737_v23 }
0x1aba   :  { %v2050_v32 = vmul.f32 %v2755_v37, %v2739_v24 }
0x1abb   :  { %2059 = vst [vmem:[%s3329_s8 + $0x18] sm:$0xff] %v2051_v38 }
0x1abc   :  { %v2757_v43 = vpop.eup %2756  ;;  %2058 = vst [vmem:[%s3329_s8 + $0x10] sm:$0xff] %v2050_v32 }
0x1abd   :  { %v2759_v44 = vpop.eup %2758  ;;  %v2053_v45 = vmul.f32 %v2757_v43, %v2741_v25 }
0x1abe   :  { %v2052_v46 = vmul.f32 %v2759_v44, %v2743_v28 }
0x1abf   :  { %2061 = vst [vmem:[%s3329_s8 + $0x28] sm:$0xff] %v2053_v45 }
0x1ac0   :  { %2060 = vst [vmem:[%s3329_s8 + $0x20] sm:$0xff] %v2052_v46 }
0x1b19   :  { %v2039_v54 = vpop.xlane.xlu1 %2038 }
0x1b1a   :  { %2760 = vrcp.f32 %v2039_v54  ;;  %v2037_v48 = vpop.xlane.xlu0 %2036 }
0x1b1b   :  { %2762 = vrcp.f32 %v2037_v48 }
0x1b24   :  { %v2761_v49 = vpop.eup %2760 }
0x1b25   :  { %v2763_v50 = vpop.eup %2762  ;;  %v2055_v52 = vmul.f32 %v2761_v49, %v2745_v42 }
0x1b26   :  { %v2054_v53 = vmul.f32 %v2763_v50, %v2747_v34 }
0x1b27   :  { %2063 = vst [vmem:[%s3329_s8 + $0x38] sm:$0xff] %v2055_v52 }
0x1b28   :  { %2062 = vst [vmem:[%s3329_s8 + $0x30] sm:$0xff] %v2054_v53 }

</bundles_post_ra>
